<compile_context>
chip_gen: v7x
topology: tpu7x:2x2x1
jax: 0.10.0
libtpu: 0.0.40
codegen_flags: <defaults>
</compile_context>

<pallas_src>
import functools

import jax
import jax.numpy as jnp
from jax import lax
from jax.experimental import pallas as pl
from jax.experimental.pallas import tpu as pltpu


def _leaky(v):
    return jnp.where(v >= 0, v, 0.2 * v)


# --------------------------------- kernel ----------------------------------
def evaluator_kernel(xp_ref, xg_ref, bias_ref, w1_ref, w4_ref, w5_ref,
                     gwA_ref, wN_ref, twA_ref, out_ref, gmax_ref,
                     *, tile_L, tile_B, n, offs):
    f32, bf16 = jnp.float32, jnp.bfloat16
    l_idx = pl.program_id(1)
    n_l = pl.num_programs(1)

    def bseg(name):
        off, w = offs[name]
        return bias_ref[:, off:off + w]          # (1, w) f32, lane-aligned offset

    def mm(x, w):
        # bf16 MXU path, f32 accumulation (no re-cast if operand already bf16).
        xb = x if x.dtype == bf16 else x.astype(bf16)
        return jnp.dot(xb, w, preferred_element_type=f32)

    # ---- PointNet branch on this (tile_L, tile_B) chunk of positions --------
    c_in = xp_ref.shape[-1]
    xp = xp_ref[...].reshape(tile_L * tile_B, c_in)          # bf16, free collapse

    h = jnp.maximum(mm(xp, w1_ref[...]) + bseg('b1'), 0.0)
    h = jnp.maximum(mm(h, w4_ref[...]) + bseg('b4'), 0.0)
    h = jnp.maximum(mm(h, w5_ref[...]) + bseg('b5'), 0.0).astype(bf16)  # (tile_L*tile_B, 1024)

    # torch.max(x, dim=2): max over the positions in this tile (rows l-major)...
    tmax = h[0:tile_B, :]
    for l in range(1, tile_L):
        tmax = jnp.maximum(tmax, h[l * tile_B:(l + 1) * tile_B, :])

    # ...then running max across L tiles in the VMEM scratch accumulator.
    @pl.when(l_idx == 0)
    def _():
        gmax_ref[...] = tmax

    @pl.when(l_idx > 0)
    def _():
        gmax_ref[...] = jnp.maximum(gmax_ref[...], tmax)

    # ---- remaining network only on the last L tile ---------------------------
    @pl.when(l_idx == n_l - 1)
    def _():
        gfeat = gmax_ref[...]                                # (tile_B, 1024) bf16

        # grasp branch: grasp_bn folded into fc1/fc3; fc1|fc3 fused into one matmul
        g = mm(xg_ref[...], gwA_ref[...]) + bseg('gbA')      # (tile_B, 2n)
        h1 = _leaky(g[:, :n])
        xin = _leaky(g[:, n:])
        h2 = mm(h1, wN_ref[:, 0:n]) + bseg('gb2')
        grasp_feat = _leaky(xin + h2)                        # (tile_B, n)

        # total ResBlock on concat(global_feat, grasp_feat) as split matmuls,
        # fc1|fc3 fused into one wide matmul.
        t = (mm(gfeat, twA_ref[...])
             + mm(grasp_feat, wN_ref[:, n:3 * n])
             + bseg('tbA'))                                  # (tile_B, 2n)
        t1 = _leaky(t[:, :n])
        xin_t = _leaky(t[:, n:])
        t2 = mm(t1, wN_ref[:, 3 * n:4 * n]) + bseg('tb2')
        tout = _leaky(xin_t + t2)                            # (tile_B, n)

        # Dropout(0.3) is identity in eval.  Linear(n,1)+sigmoid emitted as a
        # lane-dense (1, tile_B) row: M=1 matmul contracting the feature dim.
        ow = bseg('ow').astype(bf16)                         # (1, n)
        logits = lax.dot_general(
            ow, tout.astype(bf16),
            dimension_numbers=(((1,), (1,)), ((), ())),
            preferred_element_type=f32) + bseg('ob')         # (1, tile_B)
        out_ref[...] = 1.0 / (1.0 + jnp.exp(-logits))


# --------------------------- parameter folding -----------------------------
def _bn_fold(bn, eps=1e-5):
    g, b, m, v = bn
    s = g / jnp.sqrt(v + eps)
    return s, b - m * s


def _fold_out_bn(w, b, bn):
    """y = BN(x @ w.T + b)  ->  x @ w_eff + b_eff, w_eff: (in, out)."""
    s, t = _bn_fold(bn)
    return (w * s[:, None]).T, b * s + t


def _fold_in_affine(w, b, s_in, t_in):
    """y = (x*s_in + t_in) @ w.T + b  ->  x @ w_eff.T + b_eff (w: (out, in))."""
    return w * s_in[None, :], b + w @ t_in


def _pack_bias_slab(segs):
    """Pack 1-D f32 vectors into one (1, W) slab with 128-lane aligned offsets."""
    offs, parts, cur = {}, [], 0
    for name, a in segs:
        a = jnp.asarray(a, jnp.float32).reshape(1, -1)
        w = a.shape[1]
        pw = ((w + 127) // 128) * 128
        parts.append(jnp.pad(a, ((0, 0), (0, pw - w))))
        offs[name] = (cur, w)
        cur += pw
    return jnp.concatenate(parts, axis=1), offs


def _rup(x, m):
    return ((x + m - 1) // m) * m


# -------------------------------- wrapper -----------------------------------
def ffh_evaluator_forward(raw, pcd_array, rot_matrix, transl, n_neurons):
    B, c_in, L = pcd_array.shape
    n = n_neurons
    in_pose = 12
    bf16 = jnp.bfloat16

    # ResBlock identity-shortcut path not implemented; this module never needs it.
    assert in_pose != n and (1024 + n) != n, "Fin == Fout ResBlock not supported"

    # ---- batch tiling: >=2 tiles when possible (v7x dual TC), cap 256 rows,
    #      minimize the zero-padded remainder tile.
    G0 = 1 if B <= 16 else max(2, pl.cdiv(B, 256))
    tile_B = min(256, _rup(pl.cdiv(B, G0), 16))
    G = pl.cdiv(B, tile_B)
    Bp = G * tile_B

    # ---- L tiling: bound per-step activation footprint (~rows x 1024 f32).
    rows_budget = 1024
    tile_L = max(1, min(L, rows_budget // tile_B))
    LT = pl.cdiv(L, tile_L)
    Lp = LT * tile_L

    # ---- activations: bf16, channels-last (L, B, C); no extra G/L relayout ----
    xpt = jnp.transpose(pcd_array.astype(bf16), (2, 0, 1))            # (L, B, C)
    if Bp != B:
        xpt = jnp.pad(xpt, ((0, 0), (0, Bp - B), (0, 0)))             # zero rows (discarded)
    if Lp != L:
        xpt = jnp.pad(xpt, ((0, Lp - L), (0, 0), (0, 0)), mode='edge')  # max-safe padding

    xg = jnp.concatenate([rot_matrix.reshape(B, -1), transl], axis=1)  # (B, 12)
    if Bp != B:
        xg = jnp.pad(xg, ((0, Bp - B), (0, 0)))
    xg = xg.astype(bf16)

    # ---- fold BN into weights (one-time param glue, plain JAX, f32) ----------
    w1, b1 = _fold_out_bn(raw['conv1_w'], raw['conv1_b'], raw['bn1'])   # (C_in, 64)
    w4, b4 = _fold_out_bn(raw['conv4_w'], raw['conv4_b'], raw['bn2'])   # (64, 128)
    w5, b5 = _fold_out_bn(raw['conv5_w'], raw['conv5_b'], raw['bn3'])   # (128, 1024)

    # grasp branch: fold grasp_bn (input affine) into fc1/fc3, then bn1 into fc1
    s_g, t_g = _bn_fold(raw['grasp_bn'])
    grb = raw['grasp_rb']
    w1g, b1g = _fold_in_affine(grb['fc1_w'], grb['fc1_b'], s_g, t_g)
    gw1, gb1 = _fold_out_bn(w1g, b1g, grb['bn1'])                       # (12, n)
    w3g, b3g = _fold_in_affine(grb['fc3_w'], grb['fc3_b'], s_g, t_g)
    gw3, gb3 = w3g.T, b3g                                               # (12, n)
    gw2, gb2 = _fold_out_bn(grb['fc2_w'], grb['fc2_b'], grb['bn2'])     # (n, n)
    gwA = jnp.concatenate([gw1, gw3], axis=1)                           # (12, 2n)
    gbA = jnp.concatenate([gb1, gb3])                                   # (2n,)

    # total ResBlock (1024+n -> n); concat input realized as split matmuls
    trb = raw['total_rb']
    tw1, tb1 = _fold_out_bn(trb['fc1_w'], trb['fc1_b'], trb['bn1'])     # (1024+n, n)
    tw2, tb2 = _fold_out_bn(trb['fc2_w'], trb['fc2_b'], trb['bn2'])     # (n, n)
    tw3, tb3 = trb['fc3_w'].T, trb['fc3_b']                             # (1024+n, n)
    twA = jnp.concatenate([tw1[:1024], tw3[:1024]], axis=1)             # (1024, 2n)
    twB = jnp.concatenate([tw1[1024:], tw3[1024:]], axis=1)             # (n, 2n)
    tbA = jnp.concatenate([tb1, tb3])                                   # (2n,)

    # pack all n-row weights into one slab: [gw2 | tw1b | tw3b | tw2] -> (n, 4n)
    wN = jnp.concatenate([gw2, twB, tw2], axis=1)

    # single bias slab (biases, fc3 biases, output row + bias), lane-aligned
    bias_slab, offs = _pack_bias_slab([
        ('b1', b1), ('b4', b4), ('b5', b5),
        ('gbA', gbA), ('gb2', gb2),
        ('tbA', tbA), ('tb2', tb2),
        ('ow', raw['out_w'].reshape(-1)), ('ob', raw['out_b'].reshape(-1)),
    ])

    # bf16 weights (accumulation and elementwise math stay f32).
    # NOTE: BN-folded scales are baked in before the bf16 cast; with a real
    # checkpoint whose running_var is tiny, keep the affected weight f32.
    w1b, w4b, w5b = w1.astype(bf16), w4.astype(bf16), w5.astype(bf16)
    gwAb, wNb, twAb = gwA.astype(bf16), wN.astype(bf16), twA.astype(bf16)

    cmap = lambda i, l: (0, 0)
    out = pl.pallas_call(
        functools.partial(evaluator_kernel, tile_L=tile_L, tile_B=tile_B, n=n, offs=offs),
        out_shape=jax.ShapeDtypeStruct((G, tile_B), jnp.float32),
        grid=(G, LT),
        in_specs=[
            pl.BlockSpec((tile_L, tile_B, c_in), lambda i, l: (l, i, 0)),  # pcd tile
            pl.BlockSpec((tile_B, in_pose), lambda i, l: (i, 0)),          # grasp pose tile
            pl.BlockSpec(bias_slab.shape, cmap),                           # resident slabs
            pl.BlockSpec(w1b.shape, cmap),
            pl.BlockSpec(w4b.shape, cmap),
            pl.BlockSpec(w5b.shape, cmap),
            pl.BlockSpec(gwAb.shape, cmap),
            pl.BlockSpec(wNb.shape, cmap),
            pl.BlockSpec(twAb.shape, cmap),
        ],
        out_specs=pl.BlockSpec((1, tile_B), lambda i, l: (i, 0)),          # lane-dense row
        scratch_shapes=[pltpu.VMEM((tile_B, 1024), bf16)],                 # running max
        compiler_params=pltpu.CompilerParams(
            dimension_semantics=("parallel", "arbitrary")),
    )(xpt, xg, bias_slab, w1b, w4b, w5b, gwAb, wNb, twAb)
    return out.reshape(Bp, 1)[:B]


# ------------------- pure-JAX reference (PyTorch semantics) ------------------
def reference_forward(raw, pcd_array, rot_matrix, transl):
    eps = 1e-5

    def bn_c(x, p):                                   # x: (B, C, L)
        g, b, m, v = p
        return (x - m[None, :, None]) * (g / jnp.sqrt(v + eps))[None, :, None] + b[None, :, None]

    def bn_f(x, p):                                   # x: (B, F)
        g, b, m, v = p
        return (x - m) * (g / jnp.sqrt(v + eps)) + b

    def lin(x, w, b):
        return x @ w.T + b

    def conv1(x, w, b):                               # kernel_size=1 Conv1d
        return jnp.einsum('bcl,oc->bol', x, w) + b[None, :, None]

    x = jax.nn.relu(bn_c(conv1(pcd_array, raw['conv1_w'], raw['conv1_b']), raw['bn1']))
    x = jax.nn.relu(bn_c(conv1(x, raw['conv4_w'], raw['conv4_b']), raw['bn2']))
    x = jax.nn.relu(bn_c(conv1(x, raw['conv5_w'], raw['conv5_b']), raw['bn3']))
    gfeat = jnp.max(x, axis=2)                        # (B, 1024)

    B = pcd_array.shape[0]
    X = jnp.concatenate([rot_matrix.reshape(B, -1), transl], axis=1)
    X0 = bn_f(X, raw['grasp_bn'])

    def resblock(x, p):
        xin = _leaky(lin(x, p['fc3_w'], p['fc3_b']))
        h = _leaky(bn_f(lin(x, p['fc1_w'], p['fc1_b']), p['bn1']))
        h = bn_f(lin(h, p['fc2_w'], p['fc2_b']), p['bn2'])
        return _leaky(xin + h)

    gf = resblock(X0, raw['grasp_rb'])
    cat = jnp.concatenate([gfeat, gf], axis=1)
    t = resblock(cat, raw['total_rb'])
    return jax.nn.sigmoid(lin(t, raw['out_w'], raw['out_b']))


if __name__ == "__main__":
    B, in_pcd, L, in_pose, n = 2, 256, 3, 12, 128     # small, module-consistent shapes

    key = jax.random.PRNGKey(0)
    keys = iter(jax.random.split(key, 64))

    def nrm(shape, scale=0.05):
        return scale * jax.random.normal(next(keys), shape, dtype=jnp.float32)

    def bn_params(c):
        # (gamma, beta, running_mean, running_var)
        return (1.0 + nrm((c,), 0.1), nrm((c,), 0.1), nrm((c,), 0.1),
                0.5 + jnp.abs(nrm((c,), 0.2)))

    def resblock_params(fin, fout):
        return dict(fc1_w=nrm((fout, fin)), fc1_b=nrm((fout,)), bn1=bn_params(fout),
                    fc2_w=nrm((fout, fout)), fc2_b=nrm((fout,)), bn2=bn_params(fout),
                    fc3_w=nrm((fout, fin)), fc3_b=nrm((fout,)))

    raw = dict(
        conv1_w=nrm((64, in_pcd)), conv1_b=nrm((64,)), bn1=bn_params(64),
        conv4_w=nrm((128, 64)), conv4_b=nrm((128,)), bn2=bn_params(128),
        conv5_w=nrm((1024, 128)), conv5_b=nrm((1024,)), bn3=bn_params(1024),
        grasp_bn=bn_params(in_pose),
        grasp_rb=resblock_params(in_pose, n),
        total_rb=resblock_params(1024 + n, n),
        out_w=nrm((1, n)), out_b=nrm((1,)),
    )

    # deterministic example inputs (data dict: pcd_array, rot_matrix, transl)
    pcd_array = jax.random.normal(next(keys), (B, in_pcd, L), dtype=jnp.float32)
    rot_matrix = jax.random.normal(next(keys), (B, 3, 3), dtype=jnp.float32)
    transl = jax.random.normal(next(keys), (B, 3), dtype=jnp.float32)

    p_success = ffh_evaluator_forward(raw, pcd_array, rot_matrix, transl, n)
    p_success = jax.block_until_ready(p_success)

    ref = reference_forward(raw, pcd_array, rot_matrix, transl)
    assert p_success.shape == (B, 1)
    # bf16 matmul operands / bf16 pcd input -> loosened tolerance (f32 accumulation).
    assert jnp.allclose(p_success, ref, rtol=2e-2, atol=2e-2), (p_success, ref)

    print("KERNEL_OK")
</pallas_src>

<mosaic_0001>
module attributes {stable_mosaic.version = 11 : i64} {
  func.func @evaluator_kernel(%arg0: i32, %arg1: i32, %arg2: memref<3x16x256xbf16, #tpu.memory_space<vmem>>, %arg3: memref<16x12xbf16, #tpu.memory_space<vmem>>, %arg4: memref<1x2304xf32, #tpu.memory_space<vmem>>, %arg5: memref<256x64xbf16, #tpu.memory_space<vmem>>, %arg6: memref<64x128xbf16, #tpu.memory_space<vmem>>, %arg7: memref<128x1024xbf16, #tpu.memory_space<vmem>>, %arg8: memref<12x256xbf16, #tpu.memory_space<vmem>>, %arg9: memref<128x512xbf16, #tpu.memory_space<vmem>>, %arg10: memref<1024x256xbf16, #tpu.memory_space<vmem>>, %arg11: memref<1x16xf32, #tpu.memory_space<vmem>>, %arg12: memref<16x1024xbf16, #tpu.memory_space<vmem>>) attributes {dimension_semantics = [#tpu.dimension_semantics<parallel>, #tpu.dimension_semantics<arbitrary>], iteration_bounds = array<i64: 1, 1>, scalar_prefetch = 0 : i64, scratch_operands = 1 : i64, tpu.core_type = #tpu.core_type<tc>, window_params = [{transform_indices = @transform_0, window_bounds = array<i64: 3, 16, 256>}, {transform_indices = @transform_1, window_bounds = array<i64: 16, 12>}, {pipeline_mode = #tpu.pipeline_mode<synchronous>, transform_indices = @transform_2, window_bounds = array<i64: 1, 2304>}, {pipeline_mode = #tpu.pipeline_mode<synchronous>, transform_indices = @transform_3, window_bounds = array<i64: 256, 64>}, {pipeline_mode = #tpu.pipeline_mode<synchronous>, transform_indices = @transform_4, window_bounds = array<i64: 64, 128>}, {pipeline_mode = #tpu.pipeline_mode<synchronous>, transform_indices = @transform_5, window_bounds = array<i64: 128, 1024>}, {pipeline_mode = #tpu.pipeline_mode<synchronous>, transform_indices = @transform_6, window_bounds = array<i64: 12, 256>}, {pipeline_mode = #tpu.pipeline_mode<synchronous>, transform_indices = @transform_7, window_bounds = array<i64: 128, 512>}, {pipeline_mode = #tpu.pipeline_mode<synchronous>, transform_indices = @transform_8, window_bounds = array<i64: 1024, 256>}, {transform_indices = @transform_9, window_bounds = array<i64: 1, 16>}]} {
    %c0 = arith.constant 0 : index
    %c0_0 = arith.constant 0 : index
    %c0_1 = arith.constant 0 : index
    %0 = vector.load %arg2[%c0, %c0_0, %c0_1] : memref<3x16x256xbf16, #tpu.memory_space<vmem>>, vector<3x16x256xbf16>
    %1 = vector.shape_cast %0 : vector<3x16x256xbf16> to vector<48x256xbf16>
    %c0_2 = arith.constant 0 : index
    %c0_3 = arith.constant 0 : index
    %2 = vector.load %arg5[%c0_2, %c0_3] : memref<256x64xbf16, #tpu.memory_space<vmem>>, vector<256x64xbf16>
    %cst = arith.constant dense<0.000000e+00> : vector<48x64xf32>
    %3 = tpu.matmul %1, %2, %cst {dimension_numbers = #tpu.dot_dimension_numbers<[1], [0], [0], [1], [0, 0, 1, 1], [], []>} : vector<48x256xbf16>, vector<256x64xbf16>, vector<48x64xf32> -> vector<48x64xf32>
    %c0_4 = arith.constant 0 : index
    %c0_5 = arith.constant 0 : index
    %4 = vector.load %arg4[%c0_4, %c0_5] : memref<1x2304xf32, #tpu.memory_space<vmem>>, vector<1x64xf32>
    %5 = vector.broadcast %4 : vector<1x64xf32> to vector<48x64xf32>
    %6 = arith.addf %3, %5 : vector<48x64xf32>
    %cst_6 = arith.constant 0.000000e+00 : f32
    %7 = vector.broadcast %cst_6 : f32 to vector<48x64xf32>
    %8 = arith.maximumf %6, %7 : vector<48x64xf32>
    %c0_7 = arith.constant 0 : index
    %c0_8 = arith.constant 0 : index
    %9 = vector.load %arg6[%c0_7, %c0_8] : memref<64x128xbf16, #tpu.memory_space<vmem>>, vector<64x128xbf16>
    %10 = arith.truncf %8 : vector<48x64xf32> to vector<48x64xbf16>
    %cst_9 = arith.constant dense<0.000000e+00> : vector<48x128xf32>
    %11 = tpu.matmul %10, %9, %cst_9 {dimension_numbers = #tpu.dot_dimension_numbers<[1], [0], [0], [1], [0, 0, 1, 1], [], []>} : vector<48x64xbf16>, vector<64x128xbf16>, vector<48x128xf32> -> vector<48x128xf32>
    %c0_10 = arith.constant 0 : index
    %c128 = arith.constant 128 : index
    %12 = vector.load %arg4[%c0_10, %c128] : memref<1x2304xf32, #tpu.memory_space<vmem>>, vector<1x128xf32>
    %13 = vector.broadcast %12 : vector<1x128xf32> to vector<48x128xf32>
    %14 = arith.addf %11, %13 : vector<48x128xf32>
    %cst_11 = arith.constant 0.000000e+00 : f32
    %15 = vector.broadcast %cst_11 : f32 to vector<48x128xf32>
    %16 = arith.maximumf %14, %15 : vector<48x128xf32>
    %c0_12 = arith.constant 0 : index
    %c0_13 = arith.constant 0 : index
    %17 = vector.load %arg7[%c0_12, %c0_13] : memref<128x1024xbf16, #tpu.memory_space<vmem>>, vector<128x1024xbf16>
    %18 = arith.truncf %16 : vector<48x128xf32> to vector<48x128xbf16>
    %cst_14 = arith.constant dense<0.000000e+00> : vector<48x1024xf32>
    %19 = tpu.matmul %18, %17, %cst_14 {dimension_numbers = #tpu.dot_dimension_numbers<[1], [0], [0], [1], [0, 0, 1, 1], [], []>} : vector<48x128xbf16>, vector<128x1024xbf16>, vector<48x1024xf32> -> vector<48x1024xf32>
    %c0_15 = arith.constant 0 : index
    %c256 = arith.constant 256 : index
    %20 = vector.load %arg4[%c0_15, %c256] : memref<1x2304xf32, #tpu.memory_space<vmem>>, vector<1x1024xf32>
    %21 = vector.broadcast %20 : vector<1x1024xf32> to vector<48x1024xf32>
    %22 = arith.addf %19, %21 : vector<48x1024xf32>
    %cst_16 = arith.constant 0.000000e+00 : f32
    %23 = vector.broadcast %cst_16 : f32 to vector<48x1024xf32>
    %24 = arith.maximumf %22, %23 : vector<48x1024xf32>
    %25 = arith.truncf %24 : vector<48x1024xf32> to vector<48x1024xbf16>
    %26 = vector.extract_strided_slice %25 {offsets = [0, 0], sizes = [16, 1024], strides = [1, 1]} : vector<48x1024xbf16> to vector<16x1024xbf16>
    %27 = vector.extract_strided_slice %25 {offsets = [16, 0], sizes = [16, 1024], strides = [1, 1]} : vector<48x1024xbf16> to vector<16x1024xbf16>
    %28 = arith.maximumf %26, %27 : vector<16x1024xbf16>
    %29 = vector.extract_strided_slice %25 {offsets = [32, 0], sizes = [16, 1024], strides = [1, 1]} : vector<48x1024xbf16> to vector<16x1024xbf16>
    %30 = arith.maximumf %28, %29 : vector<16x1024xbf16>
    %c0_i32 = arith.constant 0 : i32
    %31 = arith.cmpi eq, %arg1, %c0_i32 : i32
    %32 = arith.extui %31 : i1 to i32
    %c0_i32_17 = arith.constant 0 : i32
    %33 = arith.cmpi ne, %32, %c0_i32_17 : i32
    scf.if %33 {
      %c0_22 = arith.constant 0 : index
      %c0_23 = arith.constant 0 : index
      %40 = vector.load %arg12[%c0_22, %c0_23] : memref<16x1024xbf16, #tpu.memory_space<vmem>>, vector<16x1024xbf16>
      tpu.vector_store %arg12[%c0_22, %c0_23], %30 {strides = array<i32>} : memref<16x1024xbf16, #tpu.memory_space<vmem>>, vector<16x1024xbf16>,
    } else {
    }
    %c0_i32_18 = arith.constant 0 : i32
    %34 = arith.cmpi sgt, %arg1, %c0_i32_18 : i32
    %35 = arith.extui %34 : i1 to i32
    %c0_i32_19 = arith.constant 0 : i32
    %36 = arith.cmpi ne, %35, %c0_i32_19 : i32
    scf.if %36 {
      %c0_22 = arith.constant 0 : index
      %c0_23 = arith.constant 0 : index
      %40 = vector.load %arg12[%c0_22, %c0_23] : memref<16x1024xbf16, #tpu.memory_space<vmem>>, vector<16x1024xbf16>
      %41 = arith.maximumf %40, %30 : vector<16x1024xbf16>
      %c0_24 = arith.constant 0 : index
      %c0_25 = arith.constant 0 : index
      %42 = vector.load %arg12[%c0_24, %c0_25] : memref<16x1024xbf16, #tpu.memory_space<vmem>>, vector<16x1024xbf16>
      tpu.vector_store %arg12[%c0_24, %c0_25], %41 {strides = array<i32>} : memref<16x1024xbf16, #tpu.memory_space<vmem>>, vector<16x1024xbf16>,
    } else {
    }
    %c0_i32_20 = arith.constant 0 : i32
    %37 = arith.cmpi eq, %arg1, %c0_i32_20 : i32
    %38 = arith.extui %37 : i1 to i32
    %c0_i32_21 = arith.constant 0 : i32
    %39 = arith.cmpi ne, %38, %c0_i32_21 : i32
    scf.if %39 {
      %c0_22 = arith.constant 0 : index
      %c0_23 = arith.constant 0 : index
      %40 = vector.load %arg12[%c0_22, %c0_23] : memref<16x1024xbf16, #tpu.memory_space<vmem>>, vector<16x1024xbf16>
      %c0_24 = arith.constant 0 : index
      %c0_25 = arith.constant 0 : index
      %41 = vector.load %arg3[%c0_24, %c0_25] : memref<16x12xbf16, #tpu.memory_space<vmem>>, vector<16x12xbf16>
      %c0_26 = arith.constant 0 : index
      %c0_27 = arith.constant 0 : index
      %42 = vector.load %arg8[%c0_26, %c0_27] : memref<12x256xbf16, #tpu.memory_space<vmem>>, vector<12x256xbf16>
      %cst_28 = arith.constant dense<0.000000e+00> : vector<16x256xf32>
      %43 = tpu.matmul %41, %42, %cst_28 {dimension_numbers = #tpu.dot_dimension_numbers<[1], [0], [0], [1], [0, 0, 1, 1], [], []>} : vector<16x12xbf16>, vector<12x256xbf16>, vector<16x256xf32> -> vector<16x256xf32>
      %c0_29 = arith.constant 0 : index
      %c1280 = arith.constant 1280 : index
      %44 = vector.load %arg4[%c0_29, %c1280] : memref<1x2304xf32, #tpu.memory_space<vmem>>, vector<1x256xf32>
      %45 = vector.broadcast %44 : vector<1x256xf32> to vector<16x256xf32>
      %46 = arith.addf %43, %45 : vector<16x256xf32>
      %47 = vector.extract_strided_slice %46 {offsets = [0, 0], sizes = [16, 128], strides = [1, 1]} : vector<16x256xf32> to vector<16x128xf32>
      %cst_30 = arith.constant 0.000000e+00 : f32
      %48 = vector.broadcast %cst_30 : f32 to vector<16x128xf32>
      %49 = arith.cmpf oge, %47, %48 : vector<16x128xf32>
      %cst_31 = arith.constant 2.000000e-01 : f32
      %50 = vector.broadcast %cst_31 : f32 to vector<16x128xf32>
      %51 = arith.mulf %50, %47 : vector<16x128xf32>
      %52 = arith.select %49, %47, %51 : vector<16x128xi1>, vector<16x128xf32>
      %53 = vector.extract_strided_slice %46 {offsets = [0, 128], sizes = [16, 128], strides = [1, 1]} : vector<16x256xf32> to vector<16x128xf32>
      %cst_32 = arith.constant 0.000000e+00 : f32
      %54 = vector.broadcast %cst_32 : f32 to vector<16x128xf32>
      %55 = arith.cmpf oge, %53, %54 : vector<16x128xf32>
      %cst_33 = arith.constant 2.000000e-01 : f32
      %56 = vector.broadcast %cst_33 : f32 to vector<16x128xf32>
      %57 = arith.mulf %56, %53 : vector<16x128xf32>
      %58 = arith.select %55, %53, %57 : vector<16x128xi1>, vector<16x128xf32>
      %c0_34 = arith.constant 0 : index
      %c0_35 = arith.constant 0 : index
      %59 = vector.load %arg9[%c0_34, %c0_35] : memref<128x512xbf16, #tpu.memory_space<vmem>>, vector<128x128xbf16>
      %60 = arith.truncf %52 : vector<16x128xf32> to vector<16x128xbf16>
      %cst_36 = arith.constant dense<0.000000e+00> : vector<16x128xf32>
      %61 = tpu.matmul %60, %59, %cst_36 {dimension_numbers = #tpu.dot_dimension_numbers<[1], [0], [0], [1], [0, 0, 1, 1], [], []>} : vector<16x128xbf16>, vector<128x128xbf16>, vector<16x128xf32> -> vector<16x128xf32>
      %c0_37 = arith.constant 0 : index
      %c1536 = arith.constant 1536 : index
      %62 = vector.load %arg4[%c0_37, %c1536] : memref<1x2304xf32, #tpu.memory_space<vmem>>, vector<1x128xf32>
      %63 = vector.broadcast %62 : vector<1x128xf32> to vector<16x128xf32>
      %64 = arith.addf %61, %63 : vector<16x128xf32>
      %65 = arith.addf %58, %64 : vector<16x128xf32>
      %cst_38 = arith.constant 0.000000e+00 : f32
      %66 = vector.broadcast %cst_38 : f32 to vector<16x128xf32>
      %67 = arith.cmpf oge, %65, %66 : vector<16x128xf32>
      %cst_39 = arith.constant 2.000000e-01 : f32
      %68 = vector.broadcast %cst_39 : f32 to vector<16x128xf32>
      %69 = arith.mulf %68, %65 : vector<16x128xf32>
      %70 = arith.select %67, %65, %69 : vector<16x128xi1>, vector<16x128xf32>
      %c0_40 = arith.constant 0 : index
      %c0_41 = arith.constant 0 : index
      %71 = vector.load %arg10[%c0_40, %c0_41] : memref<1024x256xbf16, #tpu.memory_space<vmem>>, vector<1024x256xbf16>
      %cst_42 = arith.constant dense<0.000000e+00> : vector<16x256xf32>
      %72 = tpu.matmul %40, %71, %cst_42 {dimension_numbers = #tpu.dot_dimension_numbers<[1], [0], [0], [1], [0, 0, 1, 1], [], []>} : vector<16x1024xbf16>, vector<1024x256xbf16>, vector<16x256xf32> -> vector<16x256xf32>
      %c0_43 = arith.constant 0 : index
      %c128_44 = arith.constant 128 : index
      %73 = vector.load %arg9[%c0_43, %c128_44] : memref<128x512xbf16, #tpu.memory_space<vmem>>, vector<128x256xbf16>
      %74 = arith.truncf %70 : vector<16x128xf32> to vector<16x128xbf16>
      %cst_45 = arith.constant dense<0.000000e+00> : vector<16x256xf32>
      %75 = tpu.matmul %74, %73, %cst_45 {dimension_numbers = #tpu.dot_dimension_numbers<[1], [0], [0], [1], [0, 0, 1, 1], [], []>} : vector<16x128xbf16>, vector<128x256xbf16>, vector<16x256xf32> -> vector<16x256xf32>
      %76 = arith.addf %72, %75 : vector<16x256xf32>
      %c0_46 = arith.constant 0 : index
      %c1664 = arith.constant 1664 : index
      %77 = vector.load %arg4[%c0_46, %c1664] : memref<1x2304xf32, #tpu.memory_space<vmem>>, vector<1x256xf32>
      %78 = vector.broadcast %77 : vector<1x256xf32> to vector<16x256xf32>
      %79 = arith.addf %76, %78 : vector<16x256xf32>
      %80 = vector.extract_strided_slice %79 {offsets = [0, 0], sizes = [16, 128], strides = [1, 1]} : vector<16x256xf32> to vector<16x128xf32>
      %cst_47 = arith.constant 0.000000e+00 : f32
      %81 = vector.broadcast %cst_47 : f32 to vector<16x128xf32>
      %82 = arith.cmpf oge, %80, %81 : vector<16x128xf32>
      %cst_48 = arith.constant 2.000000e-01 : f32
      %83 = vector.broadcast %cst_48 : f32 to vector<16x128xf32>
      %84 = arith.mulf %83, %80 : vector<16x128xf32>
      %85 = arith.select %82, %80, %84 : vector<16x128xi1>, vector<16x128xf32>
      %86 = vector.extract_strided_slice %79 {offsets = [0, 128], sizes = [16, 128], strides = [1, 1]} : vector<16x256xf32> to vector<16x128xf32>
      %cst_49 = arith.constant 0.000000e+00 : f32
      %87 = vector.broadcast %cst_49 : f32 to vector<16x128xf32>
      %88 = arith.cmpf oge, %86, %87 : vector<16x128xf32>
      %cst_50 = arith.constant 2.000000e-01 : f32
      %89 = vector.broadcast %cst_50 : f32 to vector<16x128xf32>
      %90 = arith.mulf %89, %86 : vector<16x128xf32>
      %91 = arith.select %88, %86, %90 : vector<16x128xi1>, vector<16x128xf32>
      %c0_51 = arith.constant 0 : index
      %c384 = arith.constant 384 : index
      %92 = vector.load %arg9[%c0_51, %c384] : memref<128x512xbf16, #tpu.memory_space<vmem>>, vector<128x128xbf16>
      %93 = arith.truncf %85 : vector<16x128xf32> to vector<16x128xbf16>
      %cst_52 = arith.constant dense<0.000000e+00> : vector<16x128xf32>
      %94 = tpu.matmul %93, %92, %cst_52 {dimension_numbers = #tpu.dot_dimension_numbers<[1], [0], [0], [1], [0, 0, 1, 1], [], []>} : vector<16x128xbf16>, vector<128x128xbf16>, vector<16x128xf32> -> vector<16x128xf32>
      %c0_53 = arith.constant 0 : index
      %c1920 = arith.constant 1920 : index
      %95 = vector.load %arg4[%c0_53, %c1920] : memref<1x2304xf32, #tpu.memory_space<vmem>>, vector<1x128xf32>
      %96 = vector.broadcast %95 : vector<1x128xf32> to vector<16x128xf32>
      %97 = arith.addf %94, %96 : vector<16x128xf32>
      %98 = arith.addf %91, %97 : vector<16x128xf32>
      %cst_54 = arith.constant 0.000000e+00 : f32
      %99 = vector.broadcast %cst_54 : f32 to vector<16x128xf32>
      %100 = arith.cmpf oge, %98, %99 : vector<16x128xf32>
      %cst_55 = arith.constant 2.000000e-01 : f32
      %101 = vector.broadcast %cst_55 : f32 to vector<16x128xf32>
      %102 = arith.mulf %101, %98 : vector<16x128xf32>
      %103 = arith.select %100, %98, %102 : vector<16x128xi1>, vector<16x128xf32>
      %c0_56 = arith.constant 0 : index
      %c2048 = arith.constant 2048 : index
      %104 = vector.load %arg4[%c0_56, %c2048] : memref<1x2304xf32, #tpu.memory_space<vmem>>, vector<1x128xf32>
      %105 = arith.truncf %104 : vector<1x128xf32> to vector<1x128xbf16>
      %106 = arith.truncf %103 : vector<16x128xf32> to vector<16x128xbf16>
      %cst_57 = arith.constant dense<0.000000e+00> : vector<1x16xf32>
      %107 = tpu.matmul %105, %106, %cst_57 {dimension_numbers = #tpu.dot_dimension_numbers<[1], [1], [0], [0], [0, 0, 1, 0], [], []>} : vector<1x128xbf16>, vector<16x128xbf16>, vector<1x16xf32> -> vector<1x16xf32>
      %c0_58 = arith.constant 0 : index
      %c2176 = arith.constant 2176 : index
      %108 = vector.load %arg4[%c0_58, %c2176] : memref<1x2304xf32, #tpu.memory_space<vmem>>, vector<1x1xf32>
      %109 = vector.broadcast %108 : vector<1x1xf32> to vector<1x16xf32>
      %110 = arith.addf %107, %109 : vector<1x16xf32>
      %cst_59 = arith.constant 0.000000e+00 : f32
      %111 = vector.broadcast %cst_59 : f32 to vector<1x16xf32>
      %112 = arith.subf %111, %110 : vector<1x16xf32>
      %113 = math.exp %112 : vector<1x16xf32>
      %cst_60 = arith.constant 1.000000e+00 : f32
      %114 = vector.broadcast %cst_60 : f32 to vector<1x16xf32>
      %115 = arith.addf %114, %113 : vector<1x16xf32>
      %cst_61 = arith.constant 1.000000e+00 : f32
      %116 = vector.broadcast %cst_61 : f32 to vector<1x16xf32>
      %117 = arith.divf %116, %115 : vector<1x16xf32>
      %c0_62 = arith.constant 0 : index
      %c0_63 = arith.constant 0 : index
      %118 = vector.load %arg11[%c0_62, %c0_63] : memref<1x16xf32, #tpu.memory_space<vmem>>, vector<1x16xf32>
      tpu.vector_store %arg11[%c0_62, %c0_63], %117 {strides = array<i32>} : memref<1x16xf32, #tpu.memory_space<vmem>>, vector<1x16xf32>,
    } else {
    }
    return
  }
  func.func @transform_0(%arg0: i32, %arg1: i32) -> (i32, i32, i32) {
    %c0_i32 = arith.constant 0 : i32
    %c0_i32_0 = arith.constant 0 : i32
    return %arg1, %arg0, %c0_i32 : i32, i32, i32
  }
  func.func @transform_1(%arg0: i32, %arg1: i32) -> (i32, i32) {
    %c0_i32 = arith.constant 0 : i32
    %c0_i32_0 = arith.constant 0 : i32
    return %arg0, %c0_i32 : i32, i32
  }
  func.func @transform_2(%arg0: i32, %arg1: i32) -> (i32, i32) {
    %c0_i32 = arith.constant 0 : i32
    %c0_i32_0 = arith.constant 0 : i32
    %c0_i32_1 = arith.constant 0 : i32
    return %c0_i32, %c0_i32_0 : i32, i32
  }
  func.func @transform_3(%arg0: i32, %arg1: i32) -> (i32, i32) {
    %c0_i32 = arith.constant 0 : i32
    %c0_i32_0 = arith.constant 0 : i32
    %c0_i32_1 = arith.constant 0 : i32
    return %c0_i32, %c0_i32_0 : i32, i32
  }
  func.func @transform_4(%arg0: i32, %arg1: i32) -> (i32, i32) {
    %c0_i32 = arith.constant 0 : i32
    %c0_i32_0 = arith.constant 0 : i32
    %c0_i32_1 = arith.constant 0 : i32
    return %c0_i32, %c0_i32_0 : i32, i32
  }
  func.func @transform_5(%arg0: i32, %arg1: i32) -> (i32, i32) {
    %c0_i32 = arith.constant 0 : i32
    %c0_i32_0 = arith.constant 0 : i32
    %c0_i32_1 = arith.constant 0 : i32
    return %c0_i32, %c0_i32_0 : i32, i32
  }
  func.func @transform_6(%arg0: i32, %arg1: i32) -> (i32, i32) {
    %c0_i32 = arith.constant 0 : i32
    %c0_i32_0 = arith.constant 0 : i32
    %c0_i32_1 = arith.constant 0 : i32
    return %c0_i32, %c0_i32_0 : i32, i32
  }
  func.func @transform_7(%arg0: i32, %arg1: i32) -> (i32, i32) {
    %c0_i32 = arith.constant 0 : i32
    %c0_i32_0 = arith.constant 0 : i32
    %c0_i32_1 = arith.constant 0 : i32
    return %c0_i32, %c0_i32_0 : i32, i32
  }
  func.func @transform_8(%arg0: i32, %arg1: i32) -> (i32, i32) {
    %c0_i32 = arith.constant 0 : i32
    %c0_i32_0 = arith.constant 0 : i32
    %c0_i32_1 = arith.constant 0 : i32
    return %c0_i32, %c0_i32_0 : i32, i32
  }
  func.func @transform_9(%arg0: i32, %arg1: i32) -> (i32, i32) {
    %c0_i32 = arith.constant 0 : i32
    %c0_i32_0 = arith.constant 0 : i32
    return %arg0, %c0_i32 : i32, i32
  }
}

</mosaic_0001>

<bundles_post_ra>
// kernel: tpu_custom_call.1
= control target key start
LH: loop header
LB: loop body
LE: loop exit
PB: predicated region body
PF: predicated region fallthrough
CT: control target
= control target key end

     0   :  { %14 = vsyncpa [#allocation4], 0  ;;  %s3979_s0 = inlined_call_operand.vmem [shape: bf16[3,16,256], index: 0, kind: input, shape index: {}]   ;;  %s3980_s1 = inlined_call_operand.vmem [shape: bf16[16,12], index: 1, kind: input, shape index: {}]   ;;  %s3981_s2 = inlined_call_operand.vmem [shape: f32[1,2304], index: 2, kind: input, shape index: {}]   ;;  %s3982_s3 = inlined_call_operand.vmem [shape: bf16[256,64], index: 3, kind: input, shape index: {}]   ;;  %s3983_s4 = inlined_call_operand.vmem [shape: bf16[64,128], index: 4, kind: input, shape index: {}]   ;;  %s3984_s5 = inlined_call_operand.hbm [shape: bf16[128,1024], index: 5, kind: input, shape index: {}]   ;;  %s3985_s6 = inlined_call_operand.vmem [shape: bf16[12,256], index: 6, kind: input, shape index: {}]   ;;  %s3986_s7 = inlined_call_operand.hbm [shape: bf16[128,512], index: 7, kind: input, shape index: {}]   ;;  %s3987_s8 = inlined_call_operand.hbm [shape: bf16[1024,256], index: 8, kind: input, shape index: {}]   ;;  %s3988_s9 = inlined_call_operand.hbm [shape: f32[1,16], index: 9, kind: output, shape index: {}]  }
   0x1   :  { %15 = vsyncpa [#allocation7], 0 }
   0x2   :  { %16 = vsyncpa [#allocation5], 0  ;;  %s3548_s30 = smov [#allocation6]   ;;  %s3454_s13 = scalar_lea.hbm %s3986_s7, 4096 }
   0x3   :  { %s46_s10 = sshll.u32 %s3548_s30, 4  ;;  %p3455_p0 = scmp.ne.s32.totalorder %s3986_s7, %s3454_s13  ;;  %s47_s10 = int_to_ptr.vmem [resolvable:$true] %s46_s10 }
   0x4   :  { %p3458_p1 = scmp.lt.u32.totalorder %s3454_s13, %s3986_s7 }
   0x6   :  { %p3460_p2 = pnand %p3458_p1, %p3455_p0 }
   0x8   :  { %3463 = shalt.err (!%p3460_p2)
}
   0x9   :  { %s3464_s18 = scalar_lea.vmem %s47_s10, 4096  ;;  %p3469_p4 = scmp.lt.s32.totalorder %s47_s10, %s47_s10 }
   0xa   :  { %p3465_p3 = scmp.ne.s32.totalorder %s47_s10, %s3464_s18  ;;  %p3470_p5 = scmp.lt.s32.totalorder %s3464_s18, %s3464_s18 }
   0xc   :  { %p3471_p6 = por %p3470_p5, %p3469_p4 }
   0xe   :  { %p3472_p7 = pnand %p3471_p6, %p3465_p3 }
  0x10   :  { %3475 = shalt.err (!%p3472_p7)
}
  0x11   :  { %s3549_s19 = smov 256   ;;  %s3550_s20 = smov 16  }
  0x12   :  { %52 = dma.hbm_to_vmem [thread:$0]  %s3986_s7, 4096, %s47_s10, [#allocation7], %s3549_s19, %s3549_s19, %s3550_s20  }
  0x13   :  { %s3551_s23 = smov [#allocation3]   ;;  %s3476_s27 = scalar_lea.hbm %s3984_s5, 8192 }
  0x14   :  { %s32_s24 = sshll.u32 %s3551_s23, 4  ;;  %p3477_p8 = scmp.ne.s32.totalorder %s3984_s5, %s3476_s27  ;;  %s33_s24 = int_to_ptr.vmem [resolvable:$true] %s32_s24 }
  0x15   :  { %p3480_p9 = scmp.lt.u32.totalorder %s3476_s27, %s3984_s5 }
  0x17   :  { %p3482_p10 = pnand %p3480_p9, %p3477_p8 }
  0x19   :  { %3485 = shalt.err (!%p3482_p10)
}
  0x1a   :  { %s3486_s12 = scalar_lea.vmem %s33_s24, 8192  ;;  %p3491_p12 = scmp.lt.s32.totalorder %s33_s24, %s33_s24 }
  0x1b   :  { %p3487_p11 = scmp.ne.s32.totalorder %s33_s24, %s3486_s12  ;;  %p3492_p13 = scmp.lt.s32.totalorder %s3486_s12, %s3486_s12 }
  0x1d   :  { %p3493_p0 = por %p3492_p13, %p3491_p12 }
  0x1f   :  { %p3494_p1 = pnand %p3493_p0, %p3487_p11 }
  0x21   :  { %3497 = shalt.err (!%p3494_p1)
}
  0x22   :  { %s3552_s7 = smov 512   ;;  %s3553_s10 = smov 32  }
  0x23   :  { %38 = dma.hbm_to_vmem [thread:$0]  %s3984_s5, 8192, %s33_s24, [#allocation4], %s3552_s7, %s3552_s7, %s3553_s10  }
  0x24   :  { %s3554_s15 = smov [#allocation8]   ;;  %s3498_s19 = scalar_lea.hbm %s3987_s8, 16384 }
  0x25   :  { %s58_s16 = sshll.u32 %s3554_s15, 4  ;;  %p3499_p2 = scmp.ne.s32.totalorder %s3987_s8, %s3498_s19  ;;  %s59_s16 = int_to_ptr.vmem [resolvable:$true] %s58_s16 }
  0x26   :  { %p3502_p3 = scmp.lt.u32.totalorder %s3498_s19, %s3987_s8 }
  0x28   :  { %p3504_p4 = pnand %p3502_p3, %p3499_p2 }
  0x2a   :  { %3507 = shalt.err (!%p3504_p4)
}
  0x2b   :  { %s3508_s25 = scalar_lea.vmem %s59_s16, 16384  ;;  %p3513_p6 = scmp.lt.s32.totalorder %s59_s16, %s59_s16 }
  0x2c   :  { %p3509_p5 = scmp.ne.s32.totalorder %s59_s16, %s3508_s25  ;;  %p3514_p7 = scmp.lt.s32.totalorder %s3508_s25, %s3508_s25 }
  0x2e   :  { %p3515_p8 = por %p3514_p7, %p3513_p6 }
  0x30   :  { %p3516_p9 = pnand %p3515_p8, %p3509_p5 }
  0x32   :  { %3519 = shalt.err (!%p3516_p9)
}
  0x33   :  { %s3555_s5 = smov 128   ;;  %s3556_s24 = smov 8  }
  0x34   :  { %64 = dma.hbm_to_vmem [thread:$0]  %s3987_s8, 16384, %s59_s16, [#allocation7], %s3555_s5, %s3555_s5, %s3556_s24  }
  0x35   :  { %3542 = dma.done.wait [#allocation4], 8192  }
  0x36   :  { %3543 = vsyncadd [#allocation4], 4294959104 }
  0x37   :  { %3544 = dma.done.wait [#allocation7], 20480  }
  0x38   :  { %3545 = vsyncadd [#allocation7], 4294946816  ;;  %v3185_v0 = vld [vmem:[%s3982_s3 + $0x40] sm:$0xff]   ;;  %v3187_v2 = vld [vmem:[%s3982_s3 + $0x48] sm:$0xff]   ;;  %v3557_v20 = vmov 0.0   ;;  %vm3558_vm0 = vmmov 0  }
  0x39   :  { %v3186_v1 = vld [vmem:[%s3982_s3] sm:$0xff]   ;;  %3028 = vmatprep.subr.bf16.mxu0 %v3185_v0  ;;  %v3188_v3 = vld [vmem:[%s3982_s3 + $0x8] sm:$0xff]   ;;  %v3189_v4 = vld [vmem:[%s3982_s3 + $0x50] sm:$0xff]   ;;  %vm351_vm1 = vcmask 523264   ;;  %vm1277_vm2 = vcmask 1045504   ;;  %vm1273_vm3 = vcmask 97280  }
  0x3a   :  { %3029 = vmatpush3.bf16.msra.mxu0 %v3186_v1  ;;  %v3190_v5 = vld [vmem:[%s3982_s3 + $0x10] sm:$0xff]   ;;  %v3191_v6 = vld [vmem:[%s3982_s3 + $0x58] sm:$0xff]   ;;  %v3193_v8 = vld [vmem:[%s3982_s3 + $0x60] sm:$0xff]   ;;  %s3560_s26 = smov [#allocation9]  }
  0x3b   :  { %3030 = vmatprep.subr.bf16.mxu0 %v3187_v2  ;;  %v3192_v7 = vld [vmem:[%s3982_s3 + $0x18] sm:$0xff]   ;;  %v3194_v9 = vld [vmem:[%s3982_s3 + $0x20] sm:$0xff]   ;;  %v3195_v10 = vld [vmem:[%s3982_s3 + $0x68] sm:$0xff]   ;;  %s2756_s27 = sshll.u32 %s3560_s26, 4  ;;  %s2757_s27 = int_to_ptr.vmem [resolvable:$true] %s2756_s27 }
  0x3c   :  { %v3203_v11 = vld [vmem:[%s3979_s0 + $0x4] ss:$8 sps:$4 sm:$0xff]   ;;  %v3197_v13 = vld [vmem:[%s3982_s3 + $0x70] sm:$0xff]   ;;  %v3199_v15 = vld [vmem:[%s3982_s3 + $0x78] sm:$0xff]   ;;  %s3524_s28 = scalar_lea.vmem %s2757_s27, 32  ;;  %p3525_p11 = scmp.lt.s32.totalorder %s2757_s27, %s2757_s27 }
  0x3d   :  { %v3196_v12 = vld [vmem:[%s3982_s3 + $0x28] sm:$0xff]   ;;  %278 = vmatprep.mubr.bf16.mxu0 %v3203_v11  ;;  %v3198_v14 = vld [vmem:[%s3982_s3 + $0x30] sm:$0xff]   ;;  %v3200_v16 = vld [vmem:[%s3982_s3 + $0x38] sm:$0xff]  }
  0x3e   :  { %3031 = vmatpush3.bf16.msra.mxu0 %v3188_v3  ;;  %v3201_v17 = vld [vmem:[%s3979_s0] ss:$8 sps:$4 sm:$0xff]   ;;  %v3204_v18 = vld [vmem:[%s3979_s0 + $0x14] ss:$8 sps:$4 sm:$0xff]   ;;  %v3206_v22 = vld [vmem:[%s3979_s0 + $0x10] ss:$8 sps:$4 sm:$0xff]  }
  0x3f   :  { %3032 = vmatprep.subr.bf16.mxu0 %v3189_v4  ;;  %v3210_v19 = vld [vmem:[%s3983_s4] sm:$0xff]   ;;  %v3211_v21 = vld [vmem:[%s3983_s4 + $0x8] sm:$0xff]   ;;  %v3212_v25 = vld [vmem:[%s3983_s4 + $0x10] sm:$0xff]  }
  0x40   :  { %v3207_v23 = vld [vmem:[%s3979_s0 + $0x24] ss:$8 sps:$4 sm:$0xff]   ;;  %v3209_v24 = vld [vmem:[%s3979_s0 + $0x20] ss:$8 sps:$4 sm:$0xff]   ;;  %v3213_v26 = vld [vmem:[%s3983_s4 + $0x18] sm:$0xff]  }
  0x41   :  { %v3731_v27 = vld [vmem:[#allocation3] sm:$0xff]  ;;  %v426_v29 = vld [vmem:[#allocation3 + $0x10] sm:$0xff] }
  0x42   :  { %3033 = vmatpush3.bf16.msra.mxu0 %v3190_v5  ;;  %v3733_v28 = vld [vmem:[#allocation3 + $0x20] sm:$0xff]  ;;  %v430_v32 = vld [vmem:[#allocation3 + $0x30] sm:$0xff] }
  0x43   :  { %3034 = vmatprep.subr.bf16.mxu0 %v3191_v6  ;;  %v2797_v30 = vcombine.low %v3731_v27, %v3733_v28  ;;  %v2798_v31 = vcombine.high %v3731_v27, %v3733_v28  ;;  %v2802_v33 = vcombine.high %v426_v29, %v430_v32  ;;  %v2801_v34 = vcombine.low %v426_v29, %v430_v32  ;;  %v434_v35 = vld [vmem:[#allocation3 + $0x50] sm:$0xff]  ;;  %v2766_v56 = vld [vmem:[%s3981_s2] ss:$0 sm:$0xff] }
  0x44   :  { %v438_v36 = vld [vmem:[#allocation3 + $0x70] sm:$0xff]  ;;  %v432_v0 = vld [vmem:[#allocation3 + $0x40] sm:$0xff] }
  0x45   :  { %v2810_v37 = vcombine.high %v434_v35, %v438_v36  ;;  %v442_v38 = vld [vmem:[#allocation3 + $0x90] sm:$0xff]  ;;  %979 = vmatprep.subr.bf16.mxu1 %v2802_v33  ;;  %v2809_v40 = vcombine.low %v434_v35, %v438_v36  ;;  %v436_v1 = vld [vmem:[#allocation3 + $0x60] sm:$0xff] }
  0x46   :  { %3035 = vmatpush3.bf16.msra.mxu0 %v3192_v7  ;;  %v446_v39 = vld [vmem:[#allocation3 + $0xb0] sm:$0xff]  ;;  %980 = vmatpush1.bf16.msra.mxu1 %v2801_v34  ;;  %v440_v11 = vld [vmem:[#allocation3 + $0x80] sm:$0xff] }
  0x47   :  { %3036 = vmatprep.subr.bf16.mxu0 %v3193_v8  ;;  %981 = vmatprep.subr.bf16.mxu1 %v2810_v37  ;;  %v2818_v41 = vcombine.high %v442_v38, %v446_v39  ;;  %v450_v42 = vld [vmem:[#allocation3 + $0xd0] sm:$0xff]  ;;  %v2817_v44 = vcombine.low %v442_v38, %v446_v39  ;;  %v456_v27 = vld [vmem:[#allocation3 + $0x100] sm:$0xff] }
  0x48   :  { %v454_v43 = vld [vmem:[#allocation3 + $0xf0] sm:$0xff]  ;;  %v460_v28 = vld [vmem:[#allocation3 + $0x120] sm:$0xff] }
  0x49   :  { %v2826_v45 = vcombine.high %v450_v42, %v454_v43  ;;  %v458_v46 = vld [vmem:[#allocation3 + $0x110] sm:$0xff]  ;;  %v2825_v48 = vcombine.low %v450_v42, %v454_v43  ;;  %v2830_v37 = vcombine.high %v456_v27, %v460_v28  ;;  %v464_v38 = vld [vmem:[#allocation3 + $0x140] sm:$0xff]  ;;  %v2829_v42 = vcombine.low %v456_v27, %v460_v28  ;;  %v453_v27 = vld [vmem:[#allocation3 + $0xe8] sm:$0xff] }
  0x4a   :  { %3037 = vmatpush3.bf16.msra.mxu0 %v3194_v9  ;;  %982 = vmatpush1.bf16.msra.mxu1 %v2809_v40  ;;  %v462_v47 = vld [vmem:[#allocation3 + $0x130] sm:$0xff]  ;;  %v2806_v9 = vcombine.high %v432_v0, %v436_v1  ;;  %v468_v39 = vld [vmem:[#allocation3 + $0x160] sm:$0xff] }
  0x4b   :  { %3038 = vmatprep.subr.bf16.mxu0 %v3195_v10  ;;  %983 = vmatprep.subr.bf16.mxu1 %v2818_v41  ;;  %v2834_v49 = vcombine.high %v458_v46, %v462_v47  ;;  %v466_v50 = vld [vmem:[#allocation3 + $0x150] sm:$0xff]  ;;  %v2833_v52 = vcombine.low %v458_v46, %v462_v47  ;;  %v472_v46 = vld [vmem:[#allocation3 + $0x180] sm:$0xff] }
  0x4c   :  { %v470_v51 = vld [vmem:[#allocation3 + $0x170] sm:$0xff]  ;;  %v476_v47 = vld [vmem:[#allocation3 + $0x1a0] sm:$0xff] }
  0x4d   :  { %v2842_v53 = vcombine.high %v466_v50, %v470_v51  ;;  %v2841_v54 = vcombine.low %v466_v50, %v470_v51  ;;  %v478_v50 = vld [vmem:[#allocation3 + $0x1b0] sm:$0xff]  ;;  %v2845_v51 = vcombine.low %v472_v46, %v476_v47 }
  0x4e   :  { %3039 = vmatpush3.bf16.msra.mxu0 %v3196_v12  ;;  %984 = vmatpush1.bf16.msra.mxu1 %v2817_v44  ;;  %v444_v12 = vld [vmem:[#allocation3 + $0xa0] sm:$0xff]  ;;  %v2838_v44 = vcombine.high %v464_v38, %v468_v39 }
  0x4f   :  { %3040 = vmatprep.subr.bf16.mxu0 %v3197_v13  ;;  %985 = vmatprep.subr.bf16.mxu1 %v2826_v45  ;;  %v2837_v45 = vcombine.low %v464_v38, %v468_v39  ;;  %v457_v38 = vld [vmem:[#allocation3 + $0x108] sm:$0xff] }
  0x50   :  { %v461_v39 = vld [vmem:[#allocation3 + $0x128] sm:$0xff] }
  0x52   :  { %3041 = vmatpush3.bf16.msra.mxu0 %v3198_v14  ;;  %986 = vmatpush1.bf16.msra.mxu1 %v2825_v48  ;;  %v2846_v48 = vcombine.high %v472_v46, %v476_v47  ;;  %v2832_v46 = vcombine.high %v457_v38, %v461_v39  ;;  %v465_v47 = vld [vmem:[#allocation3 + $0x148] sm:$0xff] }
  0x53   :  { %3042 = vmatprep.subr.bf16.mxu0 %v3199_v15  ;;  %987 = vmatprep.subr.bf16.mxu1 %v2834_v49  ;;  %v2805_v15 = vcombine.low %v432_v0, %v436_v1  ;;  %v474_v49 = vld [vmem:[#allocation3 + $0x190] sm:$0xff] }
  0x56   :  { %3043 = vmatpush3.bf16.msra.mxu0 %v3200_v16  ;;  %988 = vmatpush1.bf16.msra.mxu1 %v2833_v52  ;;  %v2850_v52 = vcombine.high %v474_v49, %v478_v50 }
  0x57   :  { %3089 = vmatprep.subr.bf16.mxu0 %v3557_v20  ;;  %989 = vmatprep.subr.bf16.mxu1 %v2842_v53  ;;  %v2849_v53 = vcombine.low %v474_v49, %v478_v50 }
  0x59   :  { %279 = vmatmul.mubr.bf16.vlgmr.msra.gmra.mrb[0].mxu0 %v3201_v17  ;;  %v2814_v17 = vcombine.high %v440_v11, %v444_v12 }
  0x5a   :  { %286 = vmatprep.mubr.bf16.mxu0 %v3204_v18  ;;  %3090 = vmatpush3.bf16.msra.mxu0 %v3210_v19  ;;  %v448_v18 = vld [vmem:[#allocation3 + $0xc0] sm:$0xff] }
  0x5b   :  { %3091 = vmatprep.subr.bf16.mxu0 %v3557_v20  ;;  %990 = vmatpush1.bf16.msra.mxu1 %v2841_v54  ;;  %v452_v19 = vld [vmem:[#allocation3 + $0xe0] sm:$0xff] }
  0x5c   :  { %v2822_v32 = vcombine.high %v448_v18, %v452_v19  ;;  %v2821_v35 = vcombine.low %v448_v18, %v452_v19  ;;  %991 = vmatprep.subr.bf16.mxu1 %v2850_v52  ;;  %v480_v54 = vld [vmem:[#allocation3 + $0x1c0] sm:$0xff] }
  0x5e   :  { %3092 = vmatpush3.bf16.msra.mxu0 %v3211_v21 }
  0x5f   :  { %3093 = vmatprep.subr.bf16.mxu0 %v3557_v20  ;;  %992 = vmatpush1.bf16.msra.mxu1 %v2849_v53 }
  0x61   :  { %287 = vmatmul.mubr.bf16.gmra.mrb[4].mxu0 %v3206_v22 }
  0x62   :  { %294 = vmatprep.mubr.bf16.mxu0 %v3207_v23  ;;  %3094 = vmatpush3.bf16.msra.mxu0 %v3212_v25  ;;  %v2813_v25 = vcombine.low %v440_v11, %v444_v12  ;;  %v3216_v11 = vld [vmem:[%s3985_s6] ss:$8 sps:$4 sm:$0x3f]  }
  0x63   :  { %3095 = vmatprep.subr.bf16.mxu0 %v3557_v20  ;;  %v433_v12 = vld [vmem:[#allocation3 + $0x48] sm:$0xff] }
  0x66   :  { %3096 = vmatpush3.bf16.msra.mxu0 %v3213_v26 }
  0x67   :  { %853 = vmatprep.subr.bf16.mxu0 %v2798_v31 }
  0x69   :  { %295 = vmatmul.mubr.bf16.gmra.mrb[8].mxu0 %v3209_v24 }
  0x6a   :  { %3097 = vmatprep.mubr.msk.bf16.mxu0 %vm3558_vm0, %v3557_v20 }
 0x12c   :  { %v3044_v55 = vpop.f32.mrb[0].mxu0 }
 0x12d   :  { %v3045_v57 = vpop.f32.mrb[1].mxu0 }
 0x12e   :  { %v3046_v58 = vadd.f32 %v3045_v57, %v3044_v55  ;;  %v3047_v59 = vpop.f32.mrb[2].mxu0  ;;  %v484_v55 = vld [vmem:[#allocation3 + $0x1e0] sm:$0xff]  ;;  %v482_v57 = vld [vmem:[#allocation3 + $0x1d0] sm:$0xff] }
 0x12f   :  { %v3048_v60 = vpop.f32.mrb[3].mxu0 }
 0x130   :  { %v281_v61 = vadd.f32 %v3046_v58, %v2766_v56  ;;  %v3049_v62 = vadd.f32 %v3048_v60, %v3047_v59  ;;  %v486_v58 = vld [vmem:[#allocation3 + $0x1f0] sm:$0xff]  ;;  %v2853_v59 = vcombine.low %v480_v54, %v484_v55 }
 0x131   :  { %v2858_v60 = vcombine.high %v482_v57, %v486_v58 }
 0x132   :  { %v284_v63 = vadd.f32 %v3049_v62, %v2766_v56  ;;  %v303_v2 = vmax.f32 %v281_v61, 0.0  ;;  %v2857_v61 = vcombine.low %v482_v57, %v486_v58  ;;  %v425_v62 = vld [vmem:[#allocation3 + $0x8] sm:$0xff] }
 0x133   :  { %993 = vmatprep.subr.bf16.mxu1 %v2858_v60  ;;  %v481_v58 = vld [vmem:[#allocation3 + $0x1c8] sm:$0xff]  ;;  %v3217_v60 = vld [vmem:[%s3980_s1] sm:$0xff]  }
 0x134   :  { %v304_v3 = vmax.f32 %v284_v63, 0.0  ;;  %v3050_v4 = vpop.f32.mrb[4].mxu0  ;;  %v429_v63 = vld [vmem:[#allocation3 + $0x28] sm:$0xff]  ;;  %994 = vmatpush1.bf16.msra.mxu1 %v2857_v61 }
 0x135   :  { %v3051_v5 = vpop.f32.mrb[5].mxu0  ;;  %v2800_v0 = vcombine.high %v425_v62, %v429_v63  ;;  %v2799_v1 = vcombine.low %v425_v62, %v429_v63  ;;  %v427_v63 = vld [vmem:[#allocation3 + $0x18] sm:$0xff] }
 0x136   :  { %v317_v6 = vpack.c.bf16 %v304_v3, %v303_v2  ;;  %v3052_v7 = vadd.f32 %v3051_v5, %v3050_v4  ;;  %v3053_v8 = vpop.f32.mrb[6].mxu0  ;;  %v3559_v2 = vmov 0   ;;  %v3214_v3 = vld [vmem:[%s3985_s6 + $0x4] ss:$8 sps:$4 sm:$0x3f]  }
 0x137   :  { %v3054_v10 = vpop.f32.mrb[7].mxu0  ;;  %1011 = vmatprep.mubr.bf16.mxu1 %v3559_v2  ;;  %3184 = vset.pattern.permute.xlu0 %v3559_v2  ;;  %v2789_v4 = vld [vmem:[%s3981_s2 + $0x1] ss:$0 sm:$0xff] }
 0x138   :  { %v289_v13 = vadd.f32 %v3052_v7, %v2766_v56  ;;  %v3055_v14 = vadd.f32 %v3054_v10, %v3053_v8  ;;  %3098 = vmatmul.mubr.msk.bf16.vlgmr.msra.gmra.mrb[12].mxu0 %vm351_vm1, %v317_v6  ;;  %2864 = vmatprep.subr.msk.bf16.mxu1 %vm1277_vm2, %v3214_v3 }
 0x139   :  { %3101 = vmatprep.mubr.msk.bf16.mxu0 %vm3558_vm0, %v3557_v20  ;;  %854 = vmatpush1.bf16.msra.mxu0 %v2797_v30 }
 0x13a   :  { %v292_v16 = vadd.f32 %v3055_v14, %v2766_v56  ;;  %855 = vmatprep.subr.bf16.mxu0 %v2806_v9  ;;  %v305_v21 = vmax.f32 %v289_v13, 0.0  ;;  %v437_v13 = vld [vmem:[#allocation3 + $0x68] sm:$0xff] }
 0x13b   :  { %v2808_v18 = vcombine.high %v433_v12, %v437_v13 }
 0x13c   :  { %v306_v22 = vmax.f32 %v292_v16, 0.0  ;;  %v3056_v23 = vpop.f32.mrb[8].mxu0 }
 0x13d   :  { %v3057_v24 = vpop.f32.mrb[9].mxu0  ;;  %856 = vmatpush1.bf16.msra.mxu0 %v2805_v15 }
 0x13e   :  { %v318_v26 = vpack.c.bf16 %v306_v22, %v305_v21  ;;  %v3058_v29 = vadd.f32 %v3057_v24, %v3056_v23  ;;  %v3059_v31 = vpop.f32.mrb[10].mxu0  ;;  %857 = vmatprep.subr.bf16.mxu0 %v2814_v17  ;;  %v1279_v17 = vsel %vm1277_vm2, %v3216_v11, 0  ;;  %v441_v21 = vld [vmem:[#allocation3 + $0x88] sm:$0xff] }
 0x13f   :  { %v3060_v33 = vpop.f32.mrb[11].mxu0  ;;  %v445_v22 = vld [vmem:[#allocation3 + $0xa8] sm:$0xff] }
 0x140   :  { %v297_v30 = vadd.f32 %v3058_v29, %v2766_v56  ;;  %v3061_v34 = vadd.f32 %v3060_v33, %v3059_v31  ;;  %3102 = vmatmul.mubr.msk.bf16.gmra.mrb[16].mxu0 %vm351_vm1, %v318_v26  ;;  %v2807_v26 = vcombine.low %v433_v12, %v437_v13  ;;  %v449_v33 = vld [vmem:[#allocation3 + $0xc8] sm:$0xff]  ;;  %v451_v12 = vld [vmem:[#allocation3 + $0xd8] sm:$0xff] }
 0x141   :  { %3105 = vmatprep.mubr.msk.bf16.mxu0 %vm3558_vm0, %v3557_v20  ;;  %858 = vmatpush1.bf16.msra.mxu0 %v2813_v25  ;;  %v455_v13 = vld [vmem:[#allocation3 + $0xf8] sm:$0xff] }
 0x142   :  { %v300_v36 = vadd.f32 %v3061_v34, %v2766_v56  ;;  %859 = vmatprep.subr.bf16.mxu0 %v2822_v32  ;;  %v307_v40 = vmax.f32 %v297_v30, 0.0  ;;  %v2854_v56 = vcombine.high %v480_v54, %v484_v55  ;;  %v2816_v32 = vcombine.high %v441_v21, %v445_v22  ;;  %v473_v54 = vld [vmem:[#allocation3 + $0x188] sm:$0xff] }
 0x143   :  { %v2815_v34 = vcombine.low %v441_v21, %v445_v22  ;;  %v477_v55 = vld [vmem:[#allocation3 + $0x1a8] sm:$0xff]  ;;  %v467_v22 = vld [vmem:[#allocation3 + $0x158] sm:$0xff] }
 0x144   :  { %v308_v41 = vmax.f32 %v300_v36, 0.0  ;;  %v2824_v36 = vcombine.high %v449_v33, %v453_v27  ;;  %v2848_v57 = vcombine.high %v473_v54, %v477_v55  ;;  %v2847_v61 = vcombine.low %v473_v54, %v477_v55  ;;  %v3289_v55 = vld [vmem:[#allocation6 + $0xa4] ss:$16 sps:$4 sm:$0xff]  }
 0x145   :  { %860 = vmatpush1.bf16.msra.mxu0 %v2821_v35 }
 0x146   :  { %v319_v43 = vpack.c.bf16 %v308_v41, %v307_v40  ;;  %861 = vmatprep.subr.bf16.mxu0 %v2830_v37 }
 0x148   :  { %3106 = vmatmul.mubr.msk.bf16.gmra.mrb[20].mxu0 %vm351_vm1, %v319_v43  ;;  %v2823_v43 = vcombine.low %v449_v33, %v453_v27  ;;  %v483_v33 = vld [vmem:[#allocation3 + $0x1d8] sm:$0xff] }
 0x149   :  { %862 = vmatpush1.bf16.msra.mxu0 %v2829_v42  ;;  %885 = vmatprep.mubr.bf16.mxu0 %v3559_v2  ;;  %v487_v27 = vld [vmem:[#allocation3 + $0x1f8] sm:$0xff] }
 0x14a   :  { %863 = vmatprep.subr.bf16.mxu0 %v2838_v44 }
 0x14d   :  { %864 = vmatpush1.bf16.msra.mxu0 %v2837_v45 }
 0x14e   :  { %865 = vmatprep.subr.bf16.mxu0 %v2846_v48  ;;  %v469_v48 = vld [vmem:[#allocation3 + $0x168] sm:$0xff] }
 0x14f   :  { %v2840_v53 = vcombine.high %v465_v47, %v469_v48 }
 0x151   :  { %866 = vmatpush1.bf16.msra.mxu0 %v2845_v51  ;;  %v2831_v51 = vcombine.low %v457_v38, %v461_v39  ;;  %v3223_v38 = vld [vmem:[#allocation6 + $0xa0] ss:$16 sps:$4 sm:$0xff]  }
 0x152   :  { %867 = vmatprep.subr.bf16.mxu0 %v2854_v56  ;;  %v2839_v56 = vcombine.low %v465_v47, %v469_v48  ;;  %v3224_v39 = vld [vmem:[#allocation6 + $0xc0] ss:$16 sps:$4 sm:$0xff]   ;;  %v3280_v47 = vld [vmem:[#allocation6 + $0x44] ss:$16 sps:$4 sm:$0xff]   ;;  %v3285_v48 = vld [vmem:[#allocation6 + $0x68] ss:$16 sps:$4 sm:$0xff]  }
 0x155   :  { %868 = vmatpush1.bf16.msra.mxu0 %v2853_v59  ;;  %v485_v59 = vld [vmem:[#allocation3 + $0x1e8] sm:$0xff] }
 0x156   :  { %916 = vmatprep.subr.bf16.mxu0 %v2800_v0  ;;  %v2856_v62 = vcombine.high %v481_v58, %v485_v59  ;;  %v431_v0 = vld [vmem:[#allocation3 + $0x38] sm:$0xff] }
 0x157   :  { %v2804_v3 = vcombine.high %v427_v63, %v431_v0 }
 0x20b   :  { %v395_v5 = vpop.f32.mrb[12].mxu0 }
 0x20c   :  { %v396_v6 = vadd.f32 %v2789_v4, %v395_v5  ;;  %v3099_v7 = vpop.f32.mrb[13].mxu0  ;;  %v439_v5 = vld [vmem:[#allocation3 + $0x78] sm:$0xff] }
 0x20d   :  { %v398_v8 = vpop.f32.mrb[14].mxu0 }
 0x20e   :  { %v399_v9 = vadd.f32 %v2789_v4, %v398_v8  ;;  %v3100_v10 = vpop.f32.mrb[15].mxu0  ;;  %v418_v14 = vmax.f32 %v396_v6, 0.0  ;;  %v2803_v6 = vcombine.low %v427_v63, %v431_v0  ;;  %v443_v8 = vld [vmem:[#allocation3 + $0x98] sm:$0xff] }
 0x210   :  { %v419_v15 = vmax.f32 %v399_v9, 0.0  ;;  %v447_v9 = vld [vmem:[#allocation3 + $0xb8] sm:$0xff] }
 0x211   :  { %v2820_v11 = vcombine.high %v443_v8, %v447_v9 }
 0x212   :  { %v3764_v16 = vpack.c.bf16 %v419_v15, %v418_v14  ;;  %v2819_v14 = vcombine.low %v443_v8, %v447_v9  ;;  %v2828_v15 = vcombine.high %v451_v12, %v455_v13 }
 0x213   :  { %v403_v19 = vpop.f32.mrb[16].mxu0 }
 0x214   :  { %v404_v23 = vadd.f32 %v2789_v4, %v403_v19  ;;  %v3103_v24 = vpop.f32.mrb[17].mxu0  ;;  %886 = vmatmul.mubr.bf16.vlgmr.msra.gmra.mrb[24].mxu0 %v3764_v16  ;;  %1012 = vmatmul.mubr.bf16.vlgmr.msra.gmra.mrb[0].mxu1 %v3764_v16  ;;  %v2827_v19 = vcombine.low %v451_v12, %v455_v13 }
 0x215   :  { %917 = vmatpush1.bf16.msra.mxu0 %v2799_v1  ;;  %v406_v25 = vpop.f32.mrb[18].mxu0  ;;  %1285 = vmatpush1.bf16.msra.mxu1 %v1279_v17  ;;  %v2855_v1 = vcombine.low %v481_v58, %v485_v59  ;;  %v459_v17 = vld [vmem:[#allocation3 + $0x118] sm:$0xff]  ;;  %v3816_v58 = vld [vmem:[%s3981_s2 + $0x2] sm:$0xff] }
 0x216   :  { %v407_v29 = vadd.f32 %v2789_v4, %v406_v25  ;;  %v3104_v31 = vpop.f32.mrb[19].mxu0  ;;  %918 = vmatprep.subr.bf16.mxu0 %v2808_v18  ;;  %895 = vmatprep.mubr.bf16.mxu0 %v3559_v2  ;;  %v420_v28 = vmax.f32 %v404_v23, 0.0  ;;  %v463_v18 = vld [vmem:[#allocation3 + $0x138] sm:$0xff] }
 0x217   :  { %1021 = vmatprep.mubr.bf16.mxu1 %v3559_v2  ;;  %v2836_v21 = vcombine.high %v459_v17, %v463_v18  ;;  %v471_v23 = vld [vmem:[#allocation3 + $0x178] sm:$0xff]  ;;  %v2835_v24 = vcombine.low %v459_v17, %v463_v18 }
 0x218   :  { %v421_v30 = vmax.f32 %v407_v29, 0.0  ;;  %v2844_v25 = vcombine.high %v467_v22, %v471_v23  ;;  %v479_v29 = vld [vmem:[#allocation3 + $0x1b8] sm:$0xff]  ;;  %v2843_v31 = vcombine.low %v467_v22, %v471_v23 }
 0x219   :  { %919 = vmatpush1.bf16.msra.mxu0 %v2807_v26  ;;  %v475_v26 = vld [vmem:[#allocation3 + $0x198] sm:$0xff] }
 0x21a   :  { %v3770_v35 = vpack.c.bf16 %v421_v30, %v420_v28  ;;  %920 = vmatprep.subr.bf16.mxu0 %v2816_v32  ;;  %v2852_v32 = vcombine.high %v475_v26, %v479_v29  ;;  %v2851_v28 = vcombine.low %v475_v26, %v479_v29  ;;  %v2860_v30 = vcombine.high %v483_v33, %v487_v27 }
 0x21b   :  { %v411_v37 = vpop.f32.mrb[20].mxu0 }
 0x21c   :  { %v412_v40 = vadd.f32 %v2789_v4, %v411_v37  ;;  %v3107_v41 = vpop.f32.mrb[21].mxu0  ;;  %896 = vmatmul.mubr.bf16.gmra.mrb[28].mxu0 %v3770_v35  ;;  %1022 = vmatmul.mubr.bf16.gmra.mrb[4].mxu1 %v3770_v35  ;;  %v3219_v37 = vld [vmem:[#allocation6 + $0x20] ss:$16 sps:$4 sm:$0xff]  }
 0x21d   :  { %921 = vmatpush1.bf16.msra.mxu0 %v2815_v34  ;;  %v414_v42 = vpop.f32.mrb[22].mxu0  ;;  %905 = vmatprep.mubr.bf16.mxu0 %v3559_v2  ;;  %v2859_v34 = vcombine.low %v483_v33, %v487_v27  ;;  %v3228_v41 = vld [vmem:[#allocation8 + $0x4] ss:$8 sps:$4 sm:$0xff]  }
 0x21e   :  { %v415_v44 = vadd.f32 %v2789_v4, %v414_v42  ;;  %v3108_v45 = vpop.f32.mrb[23].mxu0  ;;  %922 = vmatprep.subr.bf16.mxu0 %v2824_v36  ;;  %1031 = vmatprep.mubr.bf16.mxu1 %v3559_v2  ;;  %v422_v49 = vmax.f32 %v412_v40, 0.0  ;;  %v435_v4 = vld [vmem:[#allocation3 + $0x58] sm:$0xff]  ;;  %v3218_v36 = vld [vmem:[#allocation6] ss:$16 sps:$4 sm:$0xff]  }
 0x21f   :  { %v2812_v7 = vcombine.high %v435_v4, %v439_v5  ;;  %v2811_v10 = vcombine.low %v435_v4, %v439_v5  ;;  %v3225_v40 = vld [vmem:[#allocation6 + $0xe0] ss:$16 sps:$4 sm:$0xff]   ;;  %v3274_v42 = vld [vmem:[#allocation6 + $0x4] ss:$16 sps:$4 sm:$0xff]  }
 0x220   :  { %v423_v50 = vmax.f32 %v415_v44, 0.0  ;;  %v3279_v44 = vld [vmem:[#allocation6 + $0x28] ss:$16 sps:$4 sm:$0xff]   ;;  %v3277_v45 = vld [vmem:[#allocation6 + $0x24] ss:$16 sps:$4 sm:$0xff]  }
 0x221   :  { %923 = vmatpush1.bf16.msra.mxu0 %v2823_v43  ;;  %v3276_v43 = vld [vmem:[#allocation6 + $0x8] ss:$16 sps:$4 sm:$0xff]  }
 0x222   :  { %v3776_v52 = vpack.c.bf16 %v423_v50, %v422_v49  ;;  %924 = vmatprep.subr.bf16.mxu0 %v2832_v46  ;;  %1685 = vmatprep.subr.bf16.mxu1 %v3276_v43  ;;  %v3282_v46 = vld [vmem:[#allocation6 + $0x48] ss:$16 sps:$4 sm:$0xff]   ;;  %v3283_v49 = vld [vmem:[#allocation6 + $0x64] ss:$16 sps:$4 sm:$0xff]  }
 0x223   :  { %v3288_v50 = vld [vmem:[#allocation6 + $0x88] ss:$16 sps:$4 sm:$0xff]  }
 0x224   :  { %906 = vmatmul.mubr.bf16.gmra.mrb[32].mxu0 %v3776_v52  ;;  %1032 = vmatmul.mubr.bf16.gmra.mrb[8].mxu1 %v3776_v52 }
 0x225   :  { %925 = vmatpush1.bf16.msra.mxu0 %v2831_v51  ;;  %1316 = vmatprep.mubr.bf16.mxu1 %v3559_v2  ;;  %v493_v51 = vlaneseq }
 0x226   :  { %926 = vmatprep.subr.bf16.mxu0 %v2840_v53  ;;  %948 = vmatprep.mubr.bf16.mxu0 %v3559_v2  ;;  %v3291_v53 = vld [vmem:[#allocation6 + $0xa8] ss:$16 sps:$4 sm:$0xff]  }
 0x227   :  { %v3807_v54 = vshrl.u32 %v493_v51, 7 }
 0x229   :  { %927 = vmatpush1.bf16.msra.mxu0 %v2839_v56  ;;  %v3810_v56 = vsub.s32 0, %v3807_v54  ;;  %v3819_v59 = vsub.s32 1, %v3807_v54 }
 0x22a   :  { %928 = vmatprep.subr.bf16.mxu0 %v2848_v57  ;;  %v511_v57 = vsub.s32 4, %v3807_v54 }
 0x22b   :  { %v3831_v63 = vrot.slane %v3816_v58, %v3819_v59 }
 0x22c   :  { %2865 = vmatmul.mubr.msk.bf16.vlgmr.msra.gmra.mrb[12].mxu1 %vm1273_vm3, %v3217_v60  ;;  %v515_v60 = vsub.s32 5, %v3807_v54 }
 0x22d   :  { %929 = vmatpush1.bf16.msra.mxu0 %v2847_v61  ;;  %1717 = vmatprep.mubr.bf16.mxu1 %v3559_v2  ;;  %v3824_v61 = vrot.slane %v3816_v58, %v3810_v56 }
 0x22e   :  { %930 = vmatprep.subr.bf16.mxu0 %v2856_v62  ;;  %1686 = vmatpush1.bf16.msra.mxu1 %v3274_v42  ;;  %v3827_v62 = vrot.slane %v3816_v58, %v511_v57  ;;  %v3834_v0 = vrot.slane %v3816_v58, %v515_v60 }
 0x22f   :  { %1687 = vmatprep.subr.bf16.mxu1 %v3279_v44 }
 0x231   :  { %931 = vmatpush1.bf16.msra.mxu0 %v2855_v1 }
 0x232   :  { %1042 = vmatprep.subr.bf16.mxu0 %v2804_v3  ;;  %1688 = vmatpush1.bf16.msra.mxu1 %v3277_v45 }
 0x233   :  { %1689 = vmatprep.subr.bf16.mxu1 %v3282_v46 }
 0x234   :  { %949 = vmatmul.mubr.bf16.vlgmr.msra.gmra.mrb[36].mxu0 %v3764_v16 }
 0x235   :  { %1043 = vmatpush1.bf16.msra.mxu0 %v2803_v6  ;;  %958 = vmatprep.mubr.bf16.mxu0 %v3559_v2 }
 0x236   :  { %1044 = vmatprep.subr.bf16.mxu0 %v2812_v7  ;;  %1690 = vmatpush1.bf16.msra.mxu1 %v3280_v47 }
 0x237   :  { %1691 = vmatprep.subr.bf16.mxu1 %v3285_v48 }
 0x239   :  { %1045 = vmatpush1.bf16.msra.mxu0 %v2811_v10 }
 0x23a   :  { %1046 = vmatprep.subr.bf16.mxu0 %v2820_v11  ;;  %1692 = vmatpush1.bf16.msra.mxu1 %v3283_v49 }
 0x23b   :  { %1693 = vmatprep.subr.bf16.mxu1 %v3288_v50 }
 0x23c   :  { %959 = vmatmul.mubr.bf16.gmra.mrb[40].mxu0 %v3770_v35 }
 0x23d   :  { %1047 = vmatpush1.bf16.msra.mxu0 %v2819_v14  ;;  %968 = vmatprep.mubr.bf16.mxu0 %v3559_v2 }
 0x23e   :  { %1048 = vmatprep.subr.bf16.mxu0 %v2828_v15 }
 0x241   :  { %1049 = vmatpush1.bf16.msra.mxu0 %v2827_v19 }
 0x242   :  { %1050 = vmatprep.subr.bf16.mxu0 %v2836_v21 }
 0x244   :  { %969 = vmatmul.mubr.bf16.gmra.mrb[44].mxu0 %v3776_v52 }
 0x245   :  { %1051 = vmatpush1.bf16.msra.mxu0 %v2835_v24  ;;  %1074 = vmatprep.mubr.bf16.mxu0 %v3559_v2 }
 0x246   :  { %1052 = vmatprep.subr.bf16.mxu0 %v2844_v25 }
 0x249   :  { %1053 = vmatpush1.bf16.msra.mxu0 %v2843_v31 }
 0x24a   :  { %1054 = vmatprep.subr.bf16.mxu0 %v2852_v32 }
 0x24d   :  { %1055 = vmatpush1.bf16.msra.mxu0 %v2851_v28 }
 0x24e   :  { %1056 = vmatprep.subr.bf16.mxu0 %v2860_v30 }
 0x251   :  { %1057 = vmatpush1.bf16.msra.mxu0 %v2859_v34 }
 0x252   :  { %3109 = vmatprep.subr.bf16.mxu0 %v3557_v20 }
 0x254   :  { %1075 = vmatmul.mubr.bf16.vlgmr.msra.gmra.mrb[48].mxu0 %v3764_v16  ;;  %v3220_v16 = vld [vmem:[#allocation6 + $0x40] ss:$16 sps:$4 sm:$0xff]  }
 0x255   :  { %1084 = vmatprep.mubr.bf16.mxu0 %v3559_v2  ;;  %3110 = vmatpush3.bf16.msra.mxu0 %v3218_v36 }
 0x256   :  { %3111 = vmatprep.subr.bf16.mxu0 %v3557_v20 }
 0x259   :  { %3112 = vmatpush3.bf16.msra.mxu0 %v3219_v37 }
 0x25a   :  { %3113 = vmatprep.subr.bf16.mxu0 %v3557_v20 }
 0x25c   :  { %1085 = vmatmul.mubr.bf16.gmra.mrb[52].mxu0 %v3770_v35  ;;  %v3221_v35 = vld [vmem:[#allocation6 + $0x60] ss:$16 sps:$4 sm:$0xff]  }
 0x25d   :  { %1094 = vmatprep.mubr.bf16.mxu0 %v3559_v2  ;;  %3114 = vmatpush3.bf16.msra.mxu0 %v3220_v16  ;;  %v3222_v2 = vld [vmem:[#allocation6 + $0x80] ss:$16 sps:$4 sm:$0xff]  }
 0x25e   :  { %3115 = vmatprep.subr.bf16.mxu0 %v3557_v20 }
 0x261   :  { %3116 = vmatpush3.bf16.msra.mxu0 %v3221_v35 }
 0x262   :  { %3117 = vmatprep.subr.bf16.mxu0 %v3557_v20 }
 0x264   :  { %1095 = vmatmul.mubr.bf16.gmra.mrb[56].mxu0 %v3776_v52  ;;  %v3286_v52 = vld [vmem:[#allocation6 + $0x84] ss:$16 sps:$4 sm:$0xff]  }
 0x265   :  { %3125 = vmatprep.mubr.msk.bf16.mxu0 %vm3558_vm0, %v3557_v20  ;;  %3118 = vmatpush3.bf16.msra.mxu0 %v3222_v2 }
 0x266   :  { %3119 = vmatprep.subr.bf16.mxu0 %v3557_v20  ;;  %1694 = vmatpush1.bf16.msra.mxu1 %v3286_v52 }
 0x267   :  { %1695 = vmatprep.subr.bf16.mxu1 %v3291_v53 }
 0x269   :  { %3120 = vmatpush3.bf16.msra.mxu0 %v3223_v38 }
 0x26a   :  { %3121 = vmatprep.subr.bf16.mxu0 %v3557_v20  ;;  %1696 = vmatpush1.bf16.msra.mxu1 %v3289_v55 }
 0x26d   :  { %3122 = vmatpush3.bf16.msra.mxu0 %v3224_v39 }
 0x26e   :  { %3123 = vmatprep.subr.bf16.mxu0 %v3557_v20 }
 0x271   :  { %3124 = vmatpush3.bf16.msra.mxu0 %v3225_v40 }
 0x272   :  { %2368 = vmatprep.subr.bf16.mxu0 %v3228_v41 }
 0x2e7   :  { %v887_v1 = vpop.f32.mrb[24].mxu0  ;;  %v1013_v3 = vpop.f32.mrb[0].mxu1 }
 0x2e8   :  { %v888_v4 = vadd.f32 %v887_v1, %v3824_v61  ;;  %v1014_v5 = vadd.f32 %v1013_v3, %v3827_v62  ;;  %v889_v6 = vpop.f32.mrb[25].mxu0  ;;  %v1015_v7 = vpop.f32.mrb[1].mxu1 }
 0x2e9   :  { %v890_v8 = vadd.f32 %v889_v6, %v3831_v63  ;;  %v1016_v9 = vadd.f32 %v1015_v7, %v3834_v0  ;;  %v891_v10 = vpop.f32.mrb[26].mxu0  ;;  %v1017_v11 = vpop.f32.mrb[2].mxu1 }
 0x2ea   :  { %v892_v12 = vadd.f32 %v891_v10, %v3824_v61  ;;  %v1018_v13 = vadd.f32 %v1017_v11, %v3827_v62  ;;  %v893_v14 = vpop.f32.mrb[27].mxu0  ;;  %v1019_v15 = vpop.f32.mrb[3].mxu1  ;;  %v1105_v19 = vmax.f32 %v888_v4, 0.0  ;;  %v1109_v21 = vmax.f32 %v1014_v5, 0.0  ;;  %v1248_v11 = vld [vmem:[%s3981_s2 + $0xa] sm:$0x3] }
 0x2eb   :  { %v894_v17 = vadd.f32 %v893_v14, %v3831_v63  ;;  %v1020_v18 = vadd.f32 %v1019_v15, %v3834_v0  ;;  %v1106_v24 = vmax.f32 %v890_v8, 0.0  ;;  %v1110_v25 = vmax.f32 %v1016_v9, 0.0 }
 0x2ec   :  { %v1113_v22 = vmax.f32 %v892_v12, 0.0  ;;  %v1117_v23 = vmax.f32 %v1018_v13, 0.0 }
 0x2ed   :  { %v1114_v26 = vmax.f32 %v894_v17, 0.0  ;;  %v1118_v29 = vmax.f32 %v1020_v18, 0.0 }
 0x2ee   :  { %v3844_v31 = vpack.c.bf16 %v1113_v22, %v1105_v19  ;;  %v3846_v32 = vpack.c.bf16 %v1117_v23, %v1109_v21 }
 0x2ef   :  { %v3848_v33 = vpack.c.bf16 %v1114_v26, %v1106_v24  ;;  %v3850_v27 = vpack.c.bf16 %v1118_v29, %v1110_v25  ;;  %v897_v28 = vpop.f32.mrb[28].mxu0  ;;  %v1023_v30 = vpop.f32.mrb[4].mxu1  ;;  %v1253_v26 = vrot.slane %v1248_v11, %v3810_v56  ;;  %v1257_v29 = vrot.slane %v1248_v11, %v3819_v59  ;;  %v3234_v11 = vld [vmem:[#allocation8 + $0x24] ss:$8 sps:$4 sm:$0xff]  }
 0x2f0   :  { %v898_v34 = vadd.f32 %v897_v28, %v3824_v61  ;;  %v1024_v36 = vadd.f32 %v1023_v30, %v3827_v62  ;;  %v899_v37 = vpop.f32.mrb[29].mxu0  ;;  %v1025_v16 = vpop.f32.mrb[5].mxu1 }
 0x2f1   :  { %v900_v35 = vadd.f32 %v899_v37, %v3831_v63  ;;  %v1026_v2 = vadd.f32 %v1025_v16, %v3834_v0  ;;  %v901_v38 = vpop.f32.mrb[30].mxu0  ;;  %v1027_v39 = vpop.f32.mrb[6].mxu1 }
 0x2f2   :  { %v902_v40 = vadd.f32 %v901_v38, %v3824_v61  ;;  %v1028_v41 = vadd.f32 %v1027_v39, %v3827_v62  ;;  %v903_v42 = vpop.f32.mrb[31].mxu0  ;;  %v1029_v43 = vpop.f32.mrb[7].mxu1  ;;  %v1121_v46 = vmax.f32 %v898_v34, 0.0  ;;  %v1125_v47 = vmax.f32 %v1024_v36, 0.0 }
 0x2f3   :  { %v904_v44 = vadd.f32 %v903_v42, %v3831_v63  ;;  %v1030_v45 = vadd.f32 %v1029_v43, %v3834_v0  ;;  %v1122_v50 = vmax.f32 %v900_v35, 0.0  ;;  %v1126_v51 = vmax.f32 %v1026_v2, 0.0 }
 0x2f4   :  { %v1129_v48 = vmax.f32 %v902_v40, 0.0  ;;  %v1133_v49 = vmax.f32 %v1028_v41, 0.0  ;;  %v503_v39 = vsub.s32 2, %v3807_v54  ;;  %v507_v42 = vsub.s32 3, %v3807_v54 }
 0x2f5   :  { %v1130_v52 = vmax.f32 %v904_v44, 0.0  ;;  %v1134_v53 = vmax.f32 %v1030_v45, 0.0 }
 0x2f6   :  { %v1161_v55 = vpack.c.bf16 %v1129_v48, %v1121_v46  ;;  %v1165_v57 = vpack.c.bf16 %v1133_v49, %v1125_v47 }
 0x2f7   :  { %v1162_v60 = vpack.c.bf16 %v1130_v52, %v1122_v50  ;;  %v1166_v1 = vpack.c.bf16 %v1134_v53, %v1126_v51  ;;  %v907_v3 = vpop.f32.mrb[32].mxu0  ;;  %v1033_v4 = vpop.f32.mrb[8].mxu1  ;;  %v504_v50 = vrot.slane %v3816_v58, %v503_v39  ;;  %v3891_v51 = vrot.slane %v3816_v58, %v507_v42 }
 0x2f8   :  { %v1177_v5 = vmax.bf16 %v1161_v55, %v3844_v31  ;;  %v1181_v6 = vmax.bf16 %v1165_v57, %v3846_v32  ;;  %v908_v7 = vadd.f32 %v907_v3, %v3824_v61  ;;  %v1034_v8 = vadd.f32 %v1033_v4, %v3827_v62  ;;  %v909_v9 = vpop.f32.mrb[33].mxu0  ;;  %v1035_v10 = vpop.f32.mrb[9].mxu1  ;;  %v3226_v55 = vld [vmem:[#allocation8] ss:$8 sps:$4 sm:$0xff]  }
 0x2f9   :  { %v1178_v12 = vmax.bf16 %v1162_v60, %v3848_v33  ;;  %v1182_v13 = vmax.bf16 %v1166_v1, %v3850_v27  ;;  %v910_v14 = vadd.f32 %v909_v9, %v3831_v63  ;;  %v1036_v15 = vadd.f32 %v1035_v10, %v3834_v0  ;;  %v911_v17 = vpop.f32.mrb[34].mxu0  ;;  %v1037_v18 = vpop.f32.mrb[10].mxu1  ;;  %v3231_v1 = vld [vmem:[#allocation8 + $0x14] ss:$8 sps:$4 sm:$0xff]   ;;  %v3229_v9 = vld [vmem:[#allocation8 + $0x10] ss:$8 sps:$4 sm:$0xff]  }
 0x2fa   :  { %v912_v19 = vadd.f32 %v911_v17, %v3824_v61  ;;  %v1038_v21 = vadd.f32 %v1037_v18, %v3827_v62  ;;  %v913_v22 = vpop.f32.mrb[35].mxu0  ;;  %v1039_v23 = vpop.f32.mrb[11].mxu1  ;;  %v1137_v31 = vmax.f32 %v908_v7, 0.0  ;;  %v1141_v32 = vmax.f32 %v1034_v8, 0.0  ;;  %v3232_v18 = vld [vmem:[#allocation8 + $0x20] ss:$8 sps:$4 sm:$0xff]  }
 0x2fb   :  { %v914_v24 = vadd.f32 %v913_v22, %v3831_v63  ;;  %v1040_v25 = vadd.f32 %v1039_v23, %v3834_v0  ;;  %v1138_v28 = vmax.f32 %v910_v14, 0.0  ;;  %v1142_v30 = vmax.f32 %v1036_v15, 0.0  ;;  %v3237_v22 = vld [vmem:[#allocation8 + $0x34] ss:$8 sps:$4 sm:$0xff]  }
 0x2fc   :  { %v1145_v33 = vmax.f32 %v912_v19, 0.0  ;;  %v1149_v27 = vmax.f32 %v1038_v21, 0.0 }
 0x2fd   :  { %v1146_v34 = vmax.f32 %v914_v24, 0.0  ;;  %v1150_v61 = vmax.f32 %v1040_v25, 0.0 }
 0x2fe   :  { %v1169_v36 = vpack.c.bf16 %v1145_v33, %v1137_v31  ;;  %v1173_v62 = vpack.c.bf16 %v1149_v27, %v1141_v32  ;;  %v3235_v32 = vld [vmem:[#allocation8 + $0x30] ss:$8 sps:$4 sm:$0xff]   ;;  %v3240_v27 = vld [vmem:[#allocation8 + $0x44] ss:$8 sps:$4 sm:$0xff]  }
 0x2ff   :  { %v1170_v37 = vpack.c.bf16 %v1146_v34, %v1138_v28  ;;  %v1174_v16 = vpack.c.bf16 %v1150_v61, %v1142_v30  ;;  %v1318_v35 = vpop.f32.mrb[12].mxu1 }
 0x300   :  { %v3877_v63 = vmax.bf16 %v1177_v5, %v1169_v36  ;;  %v3879_v0 = vmax.bf16 %v1181_v6, %v1173_v62  ;;  %v1319_v2 = vadd.f32 %v1318_v35, %v1253_v26  ;;  %v1320_v38 = vpop.f32.mrb[13].mxu1  ;;  %v3238_v62 = vld [vmem:[#allocation8 + $0x40] ss:$8 sps:$4 sm:$0xff]   ;;  %v3243_v35 = vld [vmem:[#allocation8 + $0x54] ss:$8 sps:$4 sm:$0xff]  }
 0x301   :  { %v3882_v40 = vadd.f32 %v1320_v38, %v1257_v29  ;;  %v1322_v41 = vpop.f32.mrb[14].mxu1  ;;  %v1186_v43 = vmax.bf16 %v1178_v12, %v1170_v37  ;;  %v3885_v44 = vmax.bf16 %v1182_v13, %v1174_v16 }
 0x302   :  { %v1329_v45 = vmul.f32 0.2, %v1319_v2  ;;  %v1323_v46 = vadd.f32 %v1322_v41, %v1253_v26  ;;  %v1324_v47 = vpop.f32.mrb[15].mxu1  ;;  %vm1327_vm4 = vcmp.ge.f32.partialorder %v1319_v2, 0.0 }
 0x303   :  { %v3887_v48 = vadd.f32 %v1324_v47, %v1257_v29  ;;  %v3241_v47 = vld [vmem:[#allocation8 + $0x50] ss:$8 sps:$4 sm:$0xff]   ;;  %vm1333_vm6 = vcmp.ge.f32.partialorder %v3882_v40, 0.0 }
 0x304   :  { %vm1328_vm5 = vcmp.ge.f32.partialorder %v1323_v46, 0.0  ;;  %v1330_v49 = vmul.f32 0.2, %v1323_v46  ;;  %v1331_v52 = vsel %vm1327_vm4, %v1319_v2, %v1329_v45 }
 0x305   :  { %vm1334_vm7 = vcmp.ge.f32.partialorder %v3887_v48, 0.0 }
 0x306   :  { %v1332_v53 = vsel %vm1328_vm5, %v1323_v46, %v1330_v49 }
 0x307   :  { %v1355_v57 = vpack.c.bf16 %v1332_v53, %v1331_v52  ;;  %v950_v60 = vpop.f32.mrb[36].mxu0  ;;  %v3246_v52 = vld [vmem:[#allocation8 + $0x64] ss:$8 sps:$4 sm:$0xff]  }
 0x308   :  { %v951_v3 = vadd.f32 %v950_v60, %v504_v50  ;;  %v952_v4 = vpop.f32.mrb[37].mxu0 }
 0x309   :  { %v953_v5 = vadd.f32 %v952_v4, %v3891_v51  ;;  %v954_v6 = vpop.f32.mrb[38].mxu0  ;;  %3126 = vmatmul.mubr.bf16.vlgmr.msra.gmra.mrb[60].mxu0 %v1355_v57 }
 0x30a   :  { %v955_v7 = vadd.f32 %v954_v6, %v504_v50  ;;  %v956_v8 = vpop.f32.mrb[39].mxu0  ;;  %2369 = vmatpush1.bf16.msra.mxu0 %v3226_v55  ;;  %2400 = vmatprep.mubr.bf16.mxu0 %v1186_v43  ;;  %v1107_v12 = vmax.f32 %v951_v3, 0.0  ;;  %v3244_v3 = vld [vmem:[#allocation8 + $0x60] ss:$8 sps:$4 sm:$0xff]  }
 0x30b   :  { %v957_v10 = vadd.f32 %v956_v8, %v3891_v51  ;;  %2370 = vmatprep.subr.bf16.mxu0 %v3231_v1  ;;  %v1108_v14 = vmax.f32 %v953_v5, 0.0  ;;  %v3249_v5 = vld [vmem:[#allocation8 + $0x74] ss:$8 sps:$4 sm:$0xff]  }
 0x30c   :  { %v1115_v13 = vmax.f32 %v955_v7, 0.0  ;;  %v523_v7 = vsub.s32 7, %v3807_v54 }
 0x30d   :  { %v1116_v15 = vmax.f32 %v957_v10, 0.0 }
 0x30e   :  { %v1155_v17 = vpack.c.bf16 %v1115_v13, %v1107_v12  ;;  %2371 = vmatpush1.bf16.msra.mxu0 %v3229_v9  ;;  %v3252_v9 = vld [vmem:[#allocation8 + $0x84] ss:$8 sps:$4 sm:$0xff]   ;;  %v3250_v12 = vld [vmem:[#allocation8 + $0x80] ss:$8 sps:$4 sm:$0xff]  }
 0x30f   :  { %v1156_v19 = vpack.c.bf16 %v1116_v15, %v1108_v14  ;;  %v960_v21 = vpop.f32.mrb[40].mxu0  ;;  %2372 = vmatprep.subr.bf16.mxu0 %v3234_v11  ;;  %v524_v11 = vrot.slane %v3816_v58, %v523_v7  ;;  %v3255_v14 = vld [vmem:[#allocation8 + $0x94] ss:$8 sps:$4 sm:$0xff]   ;;  %v3270_v7 = vld [vmem:[#allocation8 + $0xe4] ss:$8 sps:$4 sm:$0xff]  }
 0x310   :  { %v961_v23 = vadd.f32 %v960_v21, %v504_v50  ;;  %v962_v24 = vpop.f32.mrb[41].mxu0 }
 0x311   :  { %v963_v25 = vadd.f32 %v962_v24, %v3891_v51  ;;  %v964_v26 = vpop.f32.mrb[42].mxu0  ;;  %v3258_v24 = vld [vmem:[#allocation8 + $0xa4] ss:$8 sps:$4 sm:$0xff]  }
 0x312   :  { %v965_v29 = vadd.f32 %v964_v26, %v504_v50  ;;  %v966_v31 = vpop.f32.mrb[43].mxu0  ;;  %2373 = vmatpush1.bf16.msra.mxu0 %v3232_v18  ;;  %v1123_v28 = vmax.f32 %v961_v23, 0.0 }
 0x313   :  { %v967_v33 = vadd.f32 %v966_v31, %v3891_v51  ;;  %2374 = vmatprep.subr.bf16.mxu0 %v3237_v22  ;;  %v1124_v34 = vmax.f32 %v963_v25, 0.0  ;;  %v3253_v22 = vld [vmem:[#allocation8 + $0x90] ss:$8 sps:$4 sm:$0xff]  }
 0x314   :  { %v1131_v30 = vmax.f32 %v965_v29, 0.0 }
 0x315   :  { %v1132_v61 = vmax.f32 %v967_v33, 0.0 }
 0x316   :  { %v1163_v36 = vpack.c.bf16 %v1131_v30, %v1123_v28  ;;  %2375 = vmatpush1.bf16.msra.mxu0 %v3235_v32  ;;  %v3256_v32 = vld [vmem:[#allocation8 + $0xa0] ss:$8 sps:$4 sm:$0xff]   ;;  %v3261_v28 = vld [vmem:[#allocation8 + $0xb4] ss:$8 sps:$4 sm:$0xff]  }
 0x317   :  { %v1164_v37 = vpack.c.bf16 %v1132_v61, %v1124_v34  ;;  %v970_v16 = vpop.f32.mrb[44].mxu0  ;;  %2376 = vmatprep.subr.bf16.mxu0 %v3240_v27 }
 0x318   :  { %v1179_v2 = vmax.bf16 %v1163_v36, %v1155_v17  ;;  %v971_v38 = vadd.f32 %v970_v16, %v504_v50  ;;  %v972_v39 = vpop.f32.mrb[45].mxu0  ;;  %v3259_v16 = vld [vmem:[#allocation8 + $0xb0] ss:$8 sps:$4 sm:$0xff]  }
 0x319   :  { %v1180_v41 = vmax.bf16 %v1164_v37, %v1156_v19  ;;  %v973_v42 = vadd.f32 %v972_v39, %v3891_v51  ;;  %v974_v43 = vpop.f32.mrb[46].mxu0 }
 0x31a   :  { %v975_v45 = vadd.f32 %v974_v43, %v504_v50  ;;  %v976_v46 = vpop.f32.mrb[47].mxu0  ;;  %2377 = vmatpush1.bf16.msra.mxu0 %v3238_v62  ;;  %v1139_v53 = vmax.f32 %v971_v38, 0.0  ;;  %v519_v50 = vsub.s32 6, %v3807_v54 }
 0x31b   :  { %v977_v49 = vadd.f32 %v976_v46, %v3891_v51  ;;  %2378 = vmatprep.subr.bf16.mxu0 %v3243_v35  ;;  %v1140_v57 = vmax.f32 %v973_v42, 0.0  ;;  %v3247_v51 = vld [vmem:[#allocation8 + $0x70] ss:$8 sps:$4 sm:$0xff]  }
 0x31c   :  { %v1147_v55 = vmax.f32 %v975_v45, 0.0  ;;  %v520_v10 = vrot.slane %v3816_v58, %v519_v50  ;;  %v3262_v45 = vld [vmem:[#allocation8 + $0xc0] ss:$8 sps:$4 sm:$0xff]  }
 0x31d   :  { %v1148_v60 = vmax.f32 %v977_v49, 0.0  ;;  %v3267_v49 = vld [vmem:[#allocation8 + $0xd4] ss:$8 sps:$4 sm:$0xff]  }
 0x31e   :  { %v1171_v1 = vpack.c.bf16 %v1147_v55, %v1139_v53  ;;  %2379 = vmatpush1.bf16.msra.mxu0 %v3241_v47 }
 0x31f   :  { %v1172_v4 = vpack.c.bf16 %v1148_v60, %v1140_v57  ;;  %2380 = vmatprep.subr.bf16.mxu0 %v3246_v52 }
 0x320   :  { %v3899_v6 = vmax.bf16 %v1179_v2, %v1171_v1  ;;  %v3264_v2 = vld [vmem:[#allocation8 + $0xc4] ss:$8 sps:$4 sm:$0xff]  }
 0x321   :  { %v3903_v8 = vmax.bf16 %v1180_v41, %v1172_v4 }
 0x322   :  { %2381 = vmatpush1.bf16.msra.mxu0 %v3244_v3 }
 0x323   :  { %2382 = vmatprep.subr.bf16.mxu0 %v3249_v5  ;;  %v3265_v5 = vld [vmem:[#allocation8 + $0xd0] ss:$8 sps:$4 sm:$0xff]  }
 0x326   :  { %2383 = vmatpush1.bf16.msra.mxu0 %v3247_v51 }
 0x327   :  { %v1076_v13 = vpop.f32.mrb[48].mxu0  ;;  %2384 = vmatprep.subr.bf16.mxu0 %v3252_v9 }
 0x328   :  { %v1077_v15 = vadd.f32 %v1076_v13, %v520_v10  ;;  %v1078_v17 = vpop.f32.mrb[49].mxu0 }
 0x329   :  { %v1079_v18 = vadd.f32 %v1078_v17, %v524_v11  ;;  %v1080_v19 = vpop.f32.mrb[50].mxu0 }
 0x32a   :  { %v1081_v54 = vadd.f32 %v1080_v19, %v520_v10  ;;  %v1082_v21 = vpop.f32.mrb[51].mxu0  ;;  %2385 = vmatpush1.bf16.msra.mxu0 %v3250_v12  ;;  %v1111_v25 = vmax.f32 %v1077_v15, 0.0  ;;  %v3268_v15 = vld [vmem:[#allocation8 + $0xe0] ss:$8 sps:$4 sm:$0xff]  }
 0x32b   :  { %v1083_v23 = vadd.f32 %v1082_v21, %v524_v11  ;;  %2386 = vmatprep.subr.bf16.mxu0 %v3255_v14  ;;  %v1112_v29 = vmax.f32 %v1079_v18, 0.0  ;;  %v3273_v18 = vld [vmem:[#allocation8 + $0xf4] ss:$8 sps:$4 sm:$0xff]  }
 0x32c   :  { %v1119_v26 = vmax.f32 %v1081_v54, 0.0  ;;  %v3292_v21 = vld [vmem:[#allocation6 + $0xc4] ss:$16 sps:$4 sm:$0xff]  }
 0x32d   :  { %v1120_v58 = vmax.f32 %v1083_v23, 0.0  ;;  %v3295_v23 = vld [vmem:[#allocation6 + $0xe4] ss:$16 sps:$4 sm:$0xff]  }
 0x32e   :  { %v1159_v31 = vpack.c.bf16 %v1119_v26, %v1111_v25  ;;  %2387 = vmatpush1.bf16.msra.mxu0 %v3253_v22  ;;  %v3297_v22 = vld [vmem:[#allocation6 + $0xe8] ss:$16 sps:$4 sm:$0xff]   ;;  %v1335_v25 = vmul.f32 0.2, %v3882_v40  ;;  %v2866_v26 = vld [vmem:[%s3981_s2 + $0xc] ss:$0 sm:$0xff] }
 0x32f   :  { %v1160_v33 = vpack.c.bf16 %v1120_v58, %v1112_v29  ;;  %v1086_v27 = vpop.f32.mrb[52].mxu0  ;;  %2388 = vmatprep.subr.bf16.mxu0 %v3258_v24  ;;  %v3300_v24 = vld [vmem:[#allocation8 + $0x104] ss:$8 sps:$4 sm:$0xff]  }
 0x330   :  { %v1087_v30 = vadd.f32 %v1086_v27, %v520_v10  ;;  %v1088_v34 = vpop.f32.mrb[53].mxu0 }
 0x331   :  { %v1089_v61 = vadd.f32 %v1088_v34, %v524_v11  ;;  %v1090_v36 = vpop.f32.mrb[54].mxu0 }
 0x332   :  { %v1091_v62 = vadd.f32 %v1090_v36, %v520_v10  ;;  %v1092_v37 = vpop.f32.mrb[55].mxu0  ;;  %2389 = vmatpush1.bf16.msra.mxu0 %v3256_v32  ;;  %v1127_v38 = vmax.f32 %v1087_v30, 0.0  ;;  %v1337_v32 = vsel %vm1333_vm6, %v3882_v40, %v1335_v25  ;;  %v3301_v40 = vld [vmem:[#allocation8 + $0x110] ss:$8 sps:$4 sm:$0xff]  }
 0x333   :  { %v1093_v35 = vadd.f32 %v1092_v37, %v524_v11  ;;  %2390 = vmatprep.subr.bf16.mxu0 %v3261_v28  ;;  %v1128_v41 = vmax.f32 %v1089_v61, 0.0  ;;  %v3349_v25 = vld [vmem:[#allocation8 + $0x210] ss:$8 sps:$4 sm:$0xff]  }
 0x334   :  { %v1135_v39 = vmax.f32 %v1091_v62, 0.0 }
 0x335   :  { %v1136_v42 = vmax.f32 %v1093_v35, 0.0  ;;  %v3298_v35 = vld [vmem:[#allocation8 + $0x100] ss:$8 sps:$4 sm:$0xff]  }
 0x336   :  { %v1167_v43 = vpack.c.bf16 %v1135_v39, %v1127_v38  ;;  %2391 = vmatpush1.bf16.msra.mxu0 %v3259_v16  ;;  %v3303_v38 = vld [vmem:[#allocation8 + $0x114] ss:$8 sps:$4 sm:$0xff]   ;;  %v3306_v39 = vld [vmem:[#allocation8 + $0x124] ss:$8 sps:$4 sm:$0xff]  }
 0x337   :  { %v1168_v46 = vpack.c.bf16 %v1136_v42, %v1128_v41  ;;  %v1096_v47 = vpop.f32.mrb[56].mxu0  ;;  %2392 = vmatprep.subr.bf16.mxu0 %v3264_v2  ;;  %v3304_v41 = vld [vmem:[#allocation8 + $0x120] ss:$8 sps:$4 sm:$0xff]   ;;  %v3307_v42 = vld [vmem:[#allocation8 + $0x130] ss:$8 sps:$4 sm:$0xff]  }
 0x338   :  { %v1183_v52 = vmax.bf16 %v1167_v43, %v1159_v31  ;;  %v1097_v53 = vadd.f32 %v1096_v47, %v520_v10  ;;  %v1098_v55 = vpop.f32.mrb[57].mxu0  ;;  %v3312_v43 = vld [vmem:[#allocation8 + $0x144] ss:$8 sps:$4 sm:$0xff]   ;;  %v3313_v47 = vld [vmem:[#allocation8 + $0x150] ss:$8 sps:$4 sm:$0xff]  }
 0x339   :  { %v1184_v57 = vmax.bf16 %v1168_v46, %v1160_v33  ;;  %v1099_v60 = vadd.f32 %v1098_v55, %v524_v11  ;;  %v1100_v1 = vpop.f32.mrb[58].mxu0  ;;  %v3315_v46 = vld [vmem:[#allocation8 + $0x154] ss:$8 sps:$4 sm:$0xff]   ;;  %v3324_v55 = vld [vmem:[#allocation8 + $0x184] ss:$8 sps:$4 sm:$0xff]  }
 0x33a   :  { %v1101_v3 = vadd.f32 %v1100_v1, %v520_v10  ;;  %v1102_v4 = vpop.f32.mrb[59].mxu0  ;;  %2393 = vmatpush1.bf16.msra.mxu0 %v3262_v45  ;;  %v1143_v51 = vmax.f32 %v1097_v53, 0.0  ;;  %v3271_v10 = vld [vmem:[#allocation8 + $0xf0] ss:$8 sps:$4 sm:$0xff]   ;;  %v3310_v45 = vld [vmem:[#allocation8 + $0x140] ss:$8 sps:$4 sm:$0xff]  }
 0x33b   :  { %v1103_v50 = vadd.f32 %v1102_v4, %v524_v11  ;;  %2394 = vmatprep.subr.bf16.mxu0 %v3267_v49  ;;  %v1144_v12 = vmax.f32 %v1099_v60, 0.0  ;;  %v3294_v11 = vld [vmem:[#allocation6 + $0xc8] ss:$16 sps:$4 sm:$0xff]   ;;  %v3318_v49 = vld [vmem:[#allocation8 + $0x164] ss:$8 sps:$4 sm:$0xff]  }
 0x33c   :  { %v1151_v9 = vmax.f32 %v1101_v3, 0.0  ;;  %1697 = vmatprep.subr.bf16.mxu1 %v3294_v11  ;;  %v3319_v53 = vld [vmem:[#allocation8 + $0x170] ss:$8 sps:$4 sm:$0xff]   ;;  %v3327_v60 = vld [vmem:[#allocation8 + $0x194] ss:$8 sps:$4 sm:$0xff]  }
 0x33d   :  { %v1152_v13 = vmax.f32 %v1103_v50, 0.0  ;;  %1698 = vmatpush1.bf16.msra.mxu1 %v3292_v21  ;;  %v3325_v1 = vld [vmem:[#allocation8 + $0x190] ss:$8 sps:$4 sm:$0xff]   ;;  %v3330_v3 = vld [vmem:[#allocation8 + $0x1a4] ss:$8 sps:$4 sm:$0xff]  }
 0x33e   :  { %v1175_v14 = vpack.c.bf16 %v1151_v9, %v1143_v51  ;;  %2395 = vmatpush1.bf16.msra.mxu0 %v3265_v5  ;;  %1699 = vmatprep.subr.bf16.mxu1 %v3297_v22  ;;  %v3328_v4 = vld [vmem:[#allocation8 + $0x1a0] ss:$8 sps:$4 sm:$0xff]   ;;  %v3333_v5 = vld [vmem:[#allocation8 + $0x1b4] ss:$8 sps:$4 sm:$0xff]   ;;  %v3331_v50 = vld [vmem:[#allocation8 + $0x1b0] ss:$8 sps:$4 sm:$0xff]  }
 0x33f   :  { %v1176_v17 = vpack.c.bf16 %v1152_v13, %v1144_v12  ;;  %2396 = vmatprep.subr.bf16.mxu0 %v3270_v7  ;;  %v3336_v7 = vld [vmem:[#allocation8 + $0x1c4] ss:$8 sps:$4 sm:$0xff]   ;;  %v3334_v51 = vld [vmem:[#allocation8 + $0x1c0] ss:$8 sps:$4 sm:$0xff]   ;;  %v3339_v9 = vld [vmem:[#allocation8 + $0x1d4] ss:$8 sps:$4 sm:$0xff]  }
 0x340   :  { %v3907_v19 = vmax.bf16 %v1183_v52, %v1175_v14  ;;  %v3321_v52 = vld [vmem:[#allocation8 + $0x174] ss:$8 sps:$4 sm:$0xff]   ;;  %v3337_v12 = vld [vmem:[#allocation8 + $0x1d0] ss:$8 sps:$4 sm:$0xff]   ;;  %v3342_v13 = vld [vmem:[#allocation8 + $0x1e4] ss:$8 sps:$4 sm:$0xff]  }
 0x341   :  { %v3909_v54 = vmax.bf16 %v1184_v57, %v1176_v17  ;;  %1700 = vmatpush1.bf16.msra.mxu1 %v3295_v23  ;;  %v3322_v57 = vld [vmem:[#allocation8 + $0x180] ss:$8 sps:$4 sm:$0xff]   ;;  %v3343_v21 = vld [vmem:[#allocation8 + $0x1f0] ss:$8 sps:$4 sm:$0xff]   ;;  %v3348_v22 = vld [vmem:[#allocation8 + $0x204] ss:$8 sps:$4 sm:$0xff]  }
 0x342   :  { %2397 = vmatpush1.bf16.msra.mxu0 %v3268_v15  ;;  %2411 = vmatprep.subr.bf16.mxu1 %v3300_v24  ;;  %v3340_v17 = vld [vmem:[#allocation8 + $0x1e0] ss:$8 sps:$4 sm:$0xff]   ;;  %v3351_v24 = vld [vmem:[#allocation8 + $0x214] ss:$8 sps:$4 sm:$0xff]  }
 0x343   :  { %2398 = vmatprep.subr.bf16.mxu0 %v3273_v18  ;;  %v3346_v23 = vld [vmem:[#allocation8 + $0x200] ss:$8 sps:$4 sm:$0xff]  }
 0x346   :  { %2399 = vmatpush1.bf16.msra.mxu0 %v3271_v10  ;;  %v3345_v10 = vld [vmem:[#allocation8 + $0x1f4] ss:$8 sps:$4 sm:$0xff]  }
 0x347   :  { %3129 = vmatprep.subr.bf16.mxu0 %v3557_v20 }
 0x349   :  { %2401 = vmatmul.mubr.bf16.vlgmr.msra.gmra.mrb[64].mxu0 %v3877_v63  ;;  %v1336_v63 = vmul.f32 0.2, %v3887_v48 }
 0x34a   :  { %3145 = vmatprep.mubr.msk.bf16.mxu0 %vm3558_vm0, %v3557_v20 }
 0x34b   :  { %v1338_v34 = vsel %vm1334_vm7, %v3887_v48, %v1336_v63  ;;  %v3309_v48 = vld [vmem:[#allocation8 + $0x134] ss:$8 sps:$4 sm:$0xff]   ;;  %v3352_v63 = vld [vmem:[#allocation8 + $0x220] ss:$8 sps:$4 sm:$0xff]  }
 0x3dc   :  { %v1445_v29 = vpop.f32.mrb[60].mxu0 }
 0x3dd   :  { %v1446_v58 = vadd.f32 %v2866_v26, %v1445_v29  ;;  %v3127_v31 = vpop.f32.mrb[61].mxu0  ;;  %v3357_v29 = vld [vmem:[#allocation8 + $0x234] ss:$8 sps:$4 sm:$0xff]  }
 0x3de   :  { %v1448_v33 = vpop.f32.mrb[62].mxu0  ;;  %v3360_v31 = vld [vmem:[#allocation8 + $0x244] ss:$8 sps:$4 sm:$0xff]  }
 0x3df   :  { %v1452_v27 = vadd.f32 %v1446_v58, %v1337_v32  ;;  %v1449_v28 = vadd.f32 %v2866_v26, %v1448_v33  ;;  %v3128_v30 = vpop.f32.mrb[63].mxu0  ;;  %v3354_v26 = vld [vmem:[#allocation8 + $0x224] ss:$8 sps:$4 sm:$0xff]   ;;  %v3355_v58 = vld [vmem:[#allocation8 + $0x230] ss:$8 sps:$4 sm:$0xff]  }
 0x3e0   :  { %v3358_v32 = vld [vmem:[#allocation8 + $0x240] ss:$8 sps:$4 sm:$0xff]   ;;  %v3363_v33 = vld [vmem:[#allocation8 + $0x254] ss:$8 sps:$4 sm:$0xff]  }
 0x3e1   :  { %v1456_v61 = vmul.f32 0.2, %v1452_v27  ;;  %v1453_v36 = vadd.f32 %v1449_v28, %v1338_v34  ;;  %vm1454_vm8 = vcmp.ge.f32.partialorder %v1452_v27, 0.0  ;;  %v3369_v28 = vld [vmem:[#allocation8 + $0x274] ss:$8 sps:$4 sm:$0xff]  }
 0x3e2   :  { %v3442_v30 = vld [vmem:[#allocation6 + $0xc] ss:$16 sps:$4 sm:$0xff]   ;;  %v3367_v34 = vld [vmem:[#allocation8 + $0x270] ss:$8 sps:$4 sm:$0xff]  }
 0x3e3   :  { %vm1455_vm9 = vcmp.ge.f32.partialorder %v1453_v36, 0.0  ;;  %v1457_v62 = vmul.f32 0.2, %v1453_v36  ;;  %v1458_v37 = vsel %vm1454_vm8, %v1452_v27, %v1456_v61  ;;  %v3366_v27 = vld [vmem:[#allocation8 + $0x264] ss:$8 sps:$4 sm:$0xff]   ;;  %3130 = vmatpush3.bf16.msra.mxu0 %v3442_v30 }
 0x3e4   :  { %v3443_v61 = vld [vmem:[#allocation6 + $0x2c] ss:$16 sps:$4 sm:$0xff]   ;;  %3131 = vmatprep.subr.bf16.mxu0 %v3557_v20 }
 0x3e5   :  { %v1459_v16 = vsel %vm1455_vm9, %v1453_v36, %v1457_v62  ;;  %v3372_v36 = vld [vmem:[#allocation8 + $0x284] ss:$8 sps:$4 sm:$0xff]   ;;  %v3370_v62 = vld [vmem:[#allocation8 + $0x280] ss:$8 sps:$4 sm:$0xff]  }
 0x3e6   :  { %v1604_v2 = vpack.c.bf16 %v1459_v16, %v1458_v37  ;;  %v3444_v37 = vld [vmem:[#allocation6 + $0x4c] ss:$16 sps:$4 sm:$0xff]  }
 0x3e7   :  { %3132 = vmatpush3.bf16.msra.mxu0 %v3443_v61  ;;  %v3375_v16 = vld [vmem:[#allocation8 + $0x294] ss:$8 sps:$4 sm:$0xff]  }
 0x3e8   :  { %1718 = vmatmul.mubr.bf16.vlgmr.msra.gmra.mrb[16].mxu1 %v1604_v2  ;;  %3133 = vmatprep.subr.bf16.mxu0 %v3557_v20  ;;  %v3445_v2 = vld [vmem:[#allocation6 + $0x6c] ss:$16 sps:$4 sm:$0xff]  }
 0x3e9   :  { %2412 = vmatpush1.bf16.msra.mxu1 %v3298_v35  ;;  %2443 = vmatprep.mubr.bf16.mxu1 %v3903_v8  ;;  %v3316_v8 = vld [vmem:[#allocation8 + $0x160] ss:$8 sps:$4 sm:$0xff]   ;;  %v3373_v35 = vld [vmem:[#allocation8 + $0x290] ss:$8 sps:$4 sm:$0xff]  }
 0x3ea   :  { %2413 = vmatprep.subr.bf16.mxu1 %v3303_v38  ;;  %v3378_v38 = vld [vmem:[#allocation8 + $0x2a4] ss:$8 sps:$4 sm:$0xff]  }
 0x3eb   :  { %3134 = vmatpush3.bf16.msra.mxu0 %v3444_v37 }
 0x3ec   :  { %3135 = vmatprep.subr.bf16.mxu0 %v3557_v20 }
 0x3ed   :  { %2414 = vmatpush1.bf16.msra.mxu1 %v3301_v40  ;;  %v3376_v40 = vld [vmem:[#allocation8 + $0x2a0] ss:$8 sps:$4 sm:$0xff]  }
 0x3ee   :  { %2415 = vmatprep.subr.bf16.mxu1 %v3306_v39  ;;  %v3446_v39 = vld [vmem:[#allocation6 + $0x8c] ss:$16 sps:$4 sm:$0xff]  }
 0x3ef   :  { %3136 = vmatpush3.bf16.msra.mxu0 %v3445_v2 }
 0x3f0   :  { %3137 = vmatprep.subr.bf16.mxu0 %v3557_v20 }
 0x3f1   :  { %2416 = vmatpush1.bf16.msra.mxu1 %v3304_v41  ;;  %v3381_v41 = vld [vmem:[#allocation8 + $0x2b4] ss:$8 sps:$4 sm:$0xff]  }
 0x3f2   :  { %2417 = vmatprep.subr.bf16.mxu1 %v3309_v48  ;;  %v3379_v48 = vld [vmem:[#allocation8 + $0x2b0] ss:$8 sps:$4 sm:$0xff]  }
 0x3f3   :  { %3138 = vmatpush3.bf16.msra.mxu0 %v3446_v39 }
 0x3f4   :  { %3139 = vmatprep.subr.bf16.mxu0 %v3557_v20 }
 0x3f5   :  { %2418 = vmatpush1.bf16.msra.mxu1 %v3307_v42  ;;  %v3384_v42 = vld [vmem:[#allocation8 + $0x2c4] ss:$8 sps:$4 sm:$0xff]  }
 0x3f6   :  { %2419 = vmatprep.subr.bf16.mxu1 %v3312_v43  ;;  %v3382_v43 = vld [vmem:[#allocation8 + $0x2c0] ss:$8 sps:$4 sm:$0xff]  }
 0x3f9   :  { %2420 = vmatpush1.bf16.msra.mxu1 %v3310_v45  ;;  %v3387_v45 = vld [vmem:[#allocation8 + $0x2d4] ss:$8 sps:$4 sm:$0xff]  }
 0x3fa   :  { %2421 = vmatprep.subr.bf16.mxu1 %v3315_v46  ;;  %v3385_v46 = vld [vmem:[#allocation8 + $0x2d0] ss:$8 sps:$4 sm:$0xff]  }
 0x3fd   :  { %2422 = vmatpush1.bf16.msra.mxu1 %v3313_v47  ;;  %v3390_v47 = vld [vmem:[#allocation8 + $0x2e4] ss:$8 sps:$4 sm:$0xff]  }
 0x3fe   :  { %2423 = vmatprep.subr.bf16.mxu1 %v3318_v49  ;;  %v3388_v49 = vld [vmem:[#allocation8 + $0x2e0] ss:$8 sps:$4 sm:$0xff]  }
 0x401   :  { %2424 = vmatpush1.bf16.msra.mxu1 %v3316_v8  ;;  %v3393_v8 = vld [vmem:[#allocation8 + $0x2f4] ss:$8 sps:$4 sm:$0xff]  }
 0x402   :  { %2425 = vmatprep.subr.bf16.mxu1 %v3321_v52  ;;  %v3391_v52 = vld [vmem:[#allocation8 + $0x2f0] ss:$8 sps:$4 sm:$0xff]  }
 0x405   :  { %2426 = vmatpush1.bf16.msra.mxu1 %v3319_v53  ;;  %v3396_v53 = vld [vmem:[#allocation8 + $0x304] ss:$8 sps:$4 sm:$0xff]  }
 0x406   :  { %2427 = vmatprep.subr.bf16.mxu1 %v3324_v55  ;;  %v3394_v55 = vld [vmem:[#allocation8 + $0x300] ss:$8 sps:$4 sm:$0xff]  }
 0x409   :  { %2428 = vmatpush1.bf16.msra.mxu1 %v3322_v57  ;;  %v3399_v57 = vld [vmem:[#allocation8 + $0x314] ss:$8 sps:$4 sm:$0xff]  }
 0x40a   :  { %2429 = vmatprep.subr.bf16.mxu1 %v3327_v60  ;;  %v3397_v60 = vld [vmem:[#allocation8 + $0x310] ss:$8 sps:$4 sm:$0xff]  }
 0x40d   :  { %2430 = vmatpush1.bf16.msra.mxu1 %v3325_v1  ;;  %v3402_v1 = vld [vmem:[#allocation8 + $0x324] ss:$8 sps:$4 sm:$0xff]  }
 0x40e   :  { %2431 = vmatprep.subr.bf16.mxu1 %v3330_v3  ;;  %v3400_v3 = vld [vmem:[#allocation8 + $0x320] ss:$8 sps:$4 sm:$0xff]  }
 0x411   :  { %2432 = vmatpush1.bf16.msra.mxu1 %v3328_v4  ;;  %v3405_v4 = vld [vmem:[#allocation8 + $0x334] ss:$8 sps:$4 sm:$0xff]  }
 0x412   :  { %2433 = vmatprep.subr.bf16.mxu1 %v3333_v5  ;;  %v3403_v5 = vld [vmem:[#allocation8 + $0x330] ss:$8 sps:$4 sm:$0xff]  }
 0x415   :  { %2434 = vmatpush1.bf16.msra.mxu1 %v3331_v50  ;;  %v3408_v50 = vld [vmem:[#allocation8 + $0x344] ss:$8 sps:$4 sm:$0xff]  }
 0x416   :  { %2435 = vmatprep.subr.bf16.mxu1 %v3336_v7  ;;  %v3406_v7 = vld [vmem:[#allocation8 + $0x340] ss:$8 sps:$4 sm:$0xff]  }
 0x419   :  { %2436 = vmatpush1.bf16.msra.mxu1 %v3334_v51  ;;  %v3411_v51 = vld [vmem:[#allocation8 + $0x354] ss:$8 sps:$4 sm:$0xff]  }
 0x41a   :  { %2437 = vmatprep.subr.bf16.mxu1 %v3339_v9  ;;  %v3414_v9 = vld [vmem:[#allocation8 + $0x364] ss:$8 sps:$4 sm:$0xff]  }
 0x41c   :  { %v3925_v14 = vpop.f32.mrb[64].mxu0 }
 0x41d   :  { %v3927_v15 = vpop.f32.mrb[65].mxu0  ;;  %2438 = vmatpush1.bf16.msra.mxu1 %v3337_v12  ;;  %v3417_v12 = vld [vmem:[#allocation8 + $0x374] ss:$8 sps:$4 sm:$0xff]  }
 0x41e   :  { %v3929_v18 = vpop.f32.mrb[66].mxu0  ;;  %2439 = vmatprep.subr.bf16.mxu1 %v3342_v13  ;;  %v3415_v13 = vld [vmem:[#allocation8 + $0x370] ss:$8 sps:$4 sm:$0xff]  }
 0x41f   :  { %v3931_v11 = vpop.f32.mrb[67].mxu0 }
 0x421   :  { %2440 = vmatpush1.bf16.msra.mxu1 %v3340_v17  ;;  %v3420_v17 = vld [vmem:[#allocation8 + $0x384] ss:$8 sps:$4 sm:$0xff]  }
 0x422   :  { %2441 = vmatprep.subr.bf16.mxu1 %v3345_v10  ;;  %v3418_v10 = vld [vmem:[#allocation8 + $0x380] ss:$8 sps:$4 sm:$0xff]  }
 0x425   :  { %2442 = vmatpush1.bf16.msra.mxu1 %v3343_v21  ;;  %v3423_v21 = vld [vmem:[#allocation8 + $0x394] ss:$8 sps:$4 sm:$0xff]  }
 0x426   :  { %2454 = vmatprep.subr.bf16.mxu1 %v3348_v22  ;;  %v3421_v22 = vld [vmem:[#allocation8 + $0x390] ss:$8 sps:$4 sm:$0xff]  }
 0x428   :  { %2444 = vmatmul.mubr.bf16.vlgmr.msra.gmra.mrb[20].mxu1 %v3899_v6  ;;  %v3361_v6 = vld [vmem:[#allocation8 + $0x250] ss:$8 sps:$4 sm:$0xff]  }
 0x429   :  { %2455 = vmatpush1.bf16.msra.mxu1 %v3346_v23  ;;  %2486 = vmatprep.mubr.bf16.mxu1 %v3885_v44  ;;  %v3364_v44 = vld [vmem:[#allocation8 + $0x260] ss:$8 sps:$4 sm:$0xff]   ;;  %v3426_v23 = vld [vmem:[#allocation8 + $0x3a4] ss:$8 sps:$4 sm:$0xff]  }
 0x42a   :  { %2456 = vmatprep.subr.bf16.mxu1 %v3351_v24  ;;  %v3424_v24 = vld [vmem:[#allocation8 + $0x3a0] ss:$8 sps:$4 sm:$0xff]  }
 0x42d   :  { %2457 = vmatpush1.bf16.msra.mxu1 %v3349_v25  ;;  %v3429_v25 = vld [vmem:[#allocation8 + $0x3b4] ss:$8 sps:$4 sm:$0xff]  }
 0x42e   :  { %2458 = vmatprep.subr.bf16.mxu1 %v3354_v26  ;;  %v3427_v26 = vld [vmem:[#allocation8 + $0x3b0] ss:$8 sps:$4 sm:$0xff]  }
 0x431   :  { %2459 = vmatpush1.bf16.msra.mxu1 %v3352_v63  ;;  %v3432_v63 = vld [vmem:[#allocation8 + $0x3c4] ss:$8 sps:$4 sm:$0xff]  }
 0x432   :  { %2460 = vmatprep.subr.bf16.mxu1 %v3357_v29  ;;  %v3430_v29 = vld [vmem:[#allocation8 + $0x3c0] ss:$8 sps:$4 sm:$0xff]  }
 0x435   :  { %2461 = vmatpush1.bf16.msra.mxu1 %v3355_v58  ;;  %v3435_v58 = vld [vmem:[#allocation8 + $0x3d4] ss:$8 sps:$4 sm:$0xff]  }
 0x436   :  { %2462 = vmatprep.subr.bf16.mxu1 %v3360_v31  ;;  %v3433_v31 = vld [vmem:[#allocation8 + $0x3d0] ss:$8 sps:$4 sm:$0xff]  }
 0x439   :  { %2463 = vmatpush1.bf16.msra.mxu1 %v3358_v32  ;;  %v3438_v32 = vld [vmem:[#allocation8 + $0x3e4] ss:$8 sps:$4 sm:$0xff]  }
 0x43a   :  { %2464 = vmatprep.subr.bf16.mxu1 %v3363_v33  ;;  %v3436_v33 = vld [vmem:[#allocation8 + $0x3e0] ss:$8 sps:$4 sm:$0xff]  }
 0x43d   :  { %2465 = vmatpush1.bf16.msra.mxu1 %v3361_v6  ;;  %v3441_v6 = vld [vmem:[#allocation8 + $0x3f4] ss:$8 sps:$4 sm:$0xff]  }
 0x43e   :  { %2466 = vmatprep.subr.bf16.mxu1 %v3366_v27  ;;  %v3439_v27 = vld [vmem:[#allocation8 + $0x3f0] ss:$8 sps:$4 sm:$0xff]  }
 0x441   :  { %2467 = vmatpush1.bf16.msra.mxu1 %v3364_v44 }
 0x442   :  { %2468 = vmatprep.subr.bf16.mxu1 %v3369_v28 }
 0x445   :  { %2469 = vmatpush1.bf16.msra.mxu1 %v3367_v34 }
 0x446   :  { %2470 = vmatprep.subr.bf16.mxu1 %v3372_v36 }
 0x449   :  { %2471 = vmatpush1.bf16.msra.mxu1 %v3370_v62 }
 0x44a   :  { %2472 = vmatprep.subr.bf16.mxu1 %v3375_v16  ;;  %v3447_v16 = vld [vmem:[#allocation6 + $0xac] ss:$16 sps:$4 sm:$0xff]  }
 0x44b   :  { %3140 = vmatpush3.bf16.msra.mxu0 %v3447_v16 }
 0x44c   :  { %3141 = vmatprep.subr.bf16.mxu0 %v3557_v20 }
 0x44d   :  { %2473 = vmatpush1.bf16.msra.mxu1 %v3373_v35  ;;  %v3448_v35 = vld [vmem:[#allocation6 + $0xcc] ss:$16 sps:$4 sm:$0xff]  }
 0x44e   :  { %2474 = vmatprep.subr.bf16.mxu1 %v3378_v38 }
 0x44f   :  { %3142 = vmatpush3.bf16.msra.mxu0 %v3448_v35 }
 0x450   :  { %3143 = vmatprep.subr.bf16.mxu0 %v3557_v20 }
 0x451   :  { %2475 = vmatpush1.bf16.msra.mxu1 %v3376_v40 }
 0x452   :  { %2476 = vmatprep.subr.bf16.mxu1 %v3381_v41 }
 0x455   :  { %2477 = vmatpush1.bf16.msra.mxu1 %v3379_v48 }
 0x456   :  { %2478 = vmatprep.subr.bf16.mxu1 %v3384_v42 }
 0x459   :  { %2479 = vmatpush1.bf16.msra.mxu1 %v3382_v43 }
 0x45a   :  { %2480 = vmatprep.subr.bf16.mxu1 %v3387_v45 }
 0x45d   :  { %2481 = vmatpush1.bf16.msra.mxu1 %v3385_v46 }
 0x45e   :  { %2482 = vmatprep.subr.bf16.mxu1 %v3390_v47 }
 0x461   :  { %2483 = vmatpush1.bf16.msra.mxu1 %v3388_v49 }
 0x462   :  { %2484 = vmatprep.subr.bf16.mxu1 %v3393_v8 }
 0x465   :  { %2485 = vmatpush1.bf16.msra.mxu1 %v3391_v52 }
 0x466   :  { %2497 = vmatprep.subr.bf16.mxu1 %v3396_v53 }
 0x468   :  { %2487 = vmatmul.mubr.bf16.vlgmr.msra.gmra.mrb[20].mxu1 %v3879_v0  ;;  %v3409_v0 = vld [vmem:[#allocation8 + $0x350] ss:$8 sps:$4 sm:$0xff]  }
 0x469   :  { %2498 = vmatpush1.bf16.msra.mxu1 %v3394_v55  ;;  %2529 = vmatprep.mubr.bf16.mxu1 %v3909_v54  ;;  %v3412_v54 = vld [vmem:[#allocation8 + $0x360] ss:$8 sps:$4 sm:$0xff]  }
 0x46a   :  { %2499 = vmatprep.subr.bf16.mxu1 %v3399_v57 }
 0x46d   :  { %2500 = vmatpush1.bf16.msra.mxu1 %v3397_v60  ;;  %v3019_v60 = vld [vmem:[%s3981_s2 + $0xf] ss:$0 sm:$0xff] }
 0x46e   :  { %2501 = vmatprep.subr.bf16.mxu1 %v3402_v1 }
 0x471   :  { %2502 = vmatpush1.bf16.msra.mxu1 %v3400_v3 }
 0x472   :  { %2503 = vmatprep.subr.bf16.mxu1 %v3405_v4 }
 0x475   :  { %2504 = vmatpush1.bf16.msra.mxu1 %v3403_v5 }
 0x476   :  { %2505 = vmatprep.subr.bf16.mxu1 %v3408_v50 }
 0x479   :  { %2506 = vmatpush1.bf16.msra.mxu1 %v3406_v7 }
 0x47a   :  { %2507 = vmatprep.subr.bf16.mxu1 %v3411_v51 }
 0x47d   :  { %2508 = vmatpush1.bf16.msra.mxu1 %v3409_v0 }
 0x47e   :  { %2509 = vmatprep.subr.bf16.mxu1 %v3414_v9 }
 0x481   :  { %2510 = vmatpush1.bf16.msra.mxu1 %v3412_v54 }
 0x482   :  { %2511 = vmatprep.subr.bf16.mxu1 %v3417_v12 }
 0x485   :  { %2512 = vmatpush1.bf16.msra.mxu1 %v3415_v13 }
 0x486   :  { %2513 = vmatprep.subr.bf16.mxu1 %v3420_v17 }
 0x489   :  { %2514 = vmatpush1.bf16.msra.mxu1 %v3418_v10 }
 0x48a   :  { %2515 = vmatprep.subr.bf16.mxu1 %v3423_v21 }
 0x48d   :  { %2516 = vmatpush1.bf16.msra.mxu1 %v3421_v22  ;;  %v2689_v22 = vld [vmem:[%s3981_s2 + $0x10] sm:$0x1] }
 0x48e   :  { %2517 = vmatprep.subr.bf16.mxu1 %v3426_v23  ;;  %v2690_v23 = vpack.c.bf16 %v2689_v22, %v2689_v22 }
 0x491   :  { %2518 = vmatpush1.bf16.msra.mxu1 %v3424_v24 }
 0x492   :  { %2519 = vmatprep.subr.bf16.mxu1 %v3429_v25 }
 0x495   :  { %2520 = vmatpush1.bf16.msra.mxu1 %v3427_v26 }
 0x496   :  { %2521 = vmatprep.subr.bf16.mxu1 %v3432_v63 }
 0x499   :  { %2522 = vmatpush1.bf16.msra.mxu1 %v3430_v29 }
 0x49a   :  { %2523 = vmatprep.subr.bf16.mxu1 %v3435_v58 }
 0x49d   :  { %2524 = vmatpush1.bf16.msra.mxu1 %v3433_v31 }
 0x49e   :  { %2525 = vmatprep.subr.bf16.mxu1 %v3438_v32 }
 0x4a1   :  { %2526 = vmatpush1.bf16.msra.mxu1 %v3436_v33 }
 0x4a2   :  { %2527 = vmatprep.subr.bf16.mxu1 %v3441_v6 }
 0x4a5   :  { %2528 = vmatpush1.bf16.msra.mxu1 %v3439_v27 }
 0x4a8   :  { %2530 = vmatmul.mubr.bf16.vlgmr.msra.gmra.mrb[20].mxu1 %v3907_v19  ;;  %v3449_v19 = vld [vmem:[#allocation6 + $0xec] ss:$16 sps:$4 sm:$0xff]  }
 0x4a9   :  { %3144 = vmatpush3.bf16.msra.mxu0 %v3449_v19 }
 0x4aa   :  { %3149 = vmatprep.subr.bf16.mxu0 %v3557_v20 }
 0x4bb   :  { %v1719_v44 = vpop.f32.mrb[16].mxu1 }
 0x4bc   :  { %v2403_v28 = vadd.f32 %v3925_v14, %v1719_v44  ;;  %v1721_v30 = vpop.f32.mrb[17].mxu1  ;;  %v2540_v14 = vld [vmem:[%s3981_s2 + $0xd] sm:$0x3] }
 0x4bd   :  { %v2405_v34 = vadd.f32 %v3927_v15, %v1721_v30  ;;  %v1723_v61 = vpop.f32.mrb[18].mxu1  ;;  %v2545_v15 = vrot.slane %v2540_v14, %v3810_v56 }
 0x4be   :  { %v2407_v36 = vadd.f32 %v3929_v18, %v1723_v61  ;;  %v1725_v62 = vpop.f32.mrb[19].mxu1 }
 0x4bf   :  { %v2409_v37 = vadd.f32 %v3931_v11, %v1725_v62  ;;  %v2549_v11 = vrot.slane %v2540_v14, %v3819_v59  ;;  %v2692_v59 = vld [vmem:[%s3981_s2 + $0x11] sm:$0x1]  ;;  %s3520_s2 = scalar_lea.vmem %s2757_s27, 16 }
 0x4c0   :  { %2695 = vperm.xlu0 %3184, %v2692_v59   ;;  %p3521_p10 = scmp.ne.s32.totalorder %s2757_s27, %s3520_s2  ;;  %p3526_p12 = scmp.lt.s32.totalorder %s3524_s28, %s3520_s2 }
 0x4c2   :  { %p3527_p13 = por %p3526_p12, %p3525_p11 }
 0x4c4   :  { %p3528_p0 = pnand %p3527_p13, %p3521_p10 }
 0x53f   :  { %v2696_v24 = vpop.permute.xlu0 %2695 }
 0x540   :  { %v2701_v25 = vrot.slane %v2696_v24, %v3810_v56 }
 0x57b   :  { %v2531_v18 = vpop.f32.mrb[20].mxu1 }
 0x57c   :  { %v3156_v2 = vadd.f32 %v2531_v18, %v2403_v28  ;;  %v2533_v38 = vpop.f32.mrb[21].mxu1 }
 0x57d   :  { %v3158_v40 = vadd.f32 %v2533_v38, %v2405_v34  ;;  %v2535_v39 = vpop.f32.mrb[22].mxu1 }
 0x57e   :  { %v2552_v41 = vadd.f32 %v3156_v2, %v2545_v15  ;;  %v3160_v48 = vadd.f32 %v2535_v39, %v2407_v36  ;;  %v2537_v42 = vpop.f32.mrb[23].mxu1 }
 0x57f   :  { %v2553_v43 = vadd.f32 %v3158_v40, %v2549_v11  ;;  %v3162_v45 = vadd.f32 %v2537_v42, %v2409_v37 }
 0x580   :  { %v2558_v46 = vmul.f32 0.2, %v2552_v41  ;;  %v2554_v47 = vadd.f32 %v3160_v48, %v2545_v15  ;;  %vm2556_vm10 = vcmp.ge.f32.partialorder %v2552_v41, 0.0 }
 0x581   :  { %v2555_v49 = vadd.f32 %v3162_v45, %v2549_v11  ;;  %v2564_v57 = vmul.f32 0.2, %v2553_v43  ;;  %vm2562_vm12 = vcmp.ge.f32.partialorder %v2553_v43, 0.0 }
 0x582   :  { %vm2557_vm11 = vcmp.ge.f32.partialorder %v2554_v47, 0.0  ;;  %v2559_v8 = vmul.f32 0.2, %v2554_v47  ;;  %v2560_v52 = vsel %vm2556_vm10, %v2552_v41, %v2558_v46 }
 0x583   :  { %v2565_v1 = vmul.f32 0.2, %v2555_v49  ;;  %vm2563_vm13 = vcmp.ge.f32.partialorder %v2555_v49, 0.0  ;;  %v2566_v50 = vsel %vm2562_vm12, %v2553_v43, %v2564_v57 }
 0x584   :  { %v2561_v53 = vsel %vm2557_vm11, %v2554_v47, %v2559_v8 }
 0x585   :  { %v2584_v55 = vpack.c.bf16 %v2561_v53, %v2560_v52  ;;  %v2567_v9 = vsel %vm2563_vm13, %v2555_v49, %v2565_v1 }
 0x587   :  { %3146 = vmatmul.mubr.bf16.vlgmr.msra.gmra.mrb[68].mxu0 %v2584_v55 }
 0x588   :  { %3151 = vmatprep.mubr.msk.bf16.mxu0 %vm3558_vm0, %v3557_v20  ;;  %vm2748_vm0 = vcmask 122880  }
 0x65a   :  { %v2674_v3 = vpop.f32.mrb[68].mxu0 }
 0x65b   :  { %v2675_v4 = vadd.f32 %v3019_v60, %v2674_v3  ;;  %v3147_v5 = vpop.f32.mrb[69].mxu0 }
 0x65c   :  { %v2677_v7 = vpop.f32.mrb[70].mxu0 }
 0x65d   :  { %v2681_v51 = vadd.f32 %v2675_v4, %v2566_v50  ;;  %v2678_v20 = vadd.f32 %v3019_v60, %v2677_v7  ;;  %v3148_v0 = vpop.f32.mrb[71].mxu0 }
 0x65f   :  { %v2685_v54 = vmul.f32 0.2, %v2681_v51  ;;  %v2682_v12 = vadd.f32 %v2678_v20, %v2567_v9  ;;  %vm2683_vm14 = vcmp.ge.f32.partialorder %v2681_v51, 0.0 }
 0x661   :  { %vm2684_vm15 = vcmp.ge.f32.partialorder %v2682_v12, 0.0  ;;  %v2686_v13 = vmul.f32 0.2, %v2682_v12  ;;  %v2687_v17 = vsel %vm2683_vm14, %v2681_v51, %v2685_v54 }
 0x663   :  { %v2688_v10 = vsel %vm2684_vm15, %v2682_v12, %v2686_v13 }
 0x664   :  { %v2691_v21 = vpack.c.bf16 %v2688_v10, %v2687_v17 }
 0x666   :  { %3150 = vmatpush3.bf16.xpose.msra.mxu0 %v2691_v21 }
 0x66d   :  { %3152 = vmatmul.mubr.bf16.vlgmr.msra.gmra.mrb[72].mxu0 %v2690_v23 }
 0x740   :  { %v2736_v26 = vpop.f32.mrb[72].mxu0 }
 0x741   :  { %v2737_v63 = vadd.f32 %v2736_v26, %v2701_v25  ;;  %v3153_v29 = vpop.f32.mrb[73].mxu0 }
 0x742   :  { %v2739_v58 = vpop.f32.mrb[74].mxu0 }
 0x743   :  { %v2742_v31 = vsub.f32 0.0, %v2737_v63  ;;  %v3154_v32 = vpop.f32.mrb[75].mxu0 }
 0x745   :  { %v2743_v33 = vmul.f32 1.442695, %v2742_v31 }
 0x747   :  { %3450 = vpow2.f32 %v2743_v33 }
 0x751   :  { %v3451_v6 = vpop.eup %3450 }
 0x752   :  { %v2745_v27 = vadd.f32 1.0, %v3451_v6 }
 0x754   :  { %3452 = vrcp.f32 %v2745_v27 }
 0x75e   :  { %v3453_v44 = vpop.eup %3452 }
 0x75f   :  { %2749 = vst.msk [vmem:[#allocation9] sm:$0x1] %vm2748_vm0, %v3453_v44 }
 0x760   :  { %3531 = shalt.err (!%p3528_p0)
}
 0x761   :  { %s3532_s0 = scalar_lea.hbm %s3988_s9, 16 }
 0x762   :  { %p3533_p1 = scmp.ne.s32.totalorder %s3988_s9, %s3532_s0  ;;  %p3536_p2 = scmp.lt.u32.totalorder %s3532_s0, %s3988_s9 }
 0x764   :  { %p3538_p3 = pnand %p3536_p2, %p3533_p1 }
 0x766   :  { %3541 = shalt.err (!%p3538_p3)
}
 0x767   :  { %2759 = dma.vmem_to_hbm [thread:$0]  %s2757_s27, 16, %s3988_s9, [#allocation5]  }
 0x768   :  { %3546 = dma.done.wait [#allocation5], 16  }
 0x769   :  { %3547 = vsyncadd [#allocation5], 4294967280 }
 0x76a   :  { %2763 = vsyncpa [#allocation4], 1 }
 0x76b   :  { %2764 = vsyncpa [#allocation7], 1 }
 0x76c   :  { %2765 = vsyncpa [#allocation5], 1 }

</bundles_post_ra>
